<compile_context>
chip_gen: v7x
topology: tpu7x:2x2x1
jax: 0.10.0
libtpu: 0.0.40
codegen_flags: <defaults>
</compile_context>

<pallas_src>
import functools

import jax
import jax.numpy as jnp
from jax import lax
from jax.experimental import pallas as pl
from jax.experimental.pallas import tpu as pltpu


def _round_up(v, m):
    return (v + m - 1) // m * m


# ----------------------------------------------------------------------------- kernel
def _mha_kernel(x_ref, wqkv_ref, wfc_ref, bfc_ref, o_ref, *,
                num_heads: int, dim_head: int, bt: int, n_pad: int, n_valid: int):
    """One grid step = bt batch elements.

    x_ref:    (bt, n_pad, D)  caller dtype
    wqkv_ref: (D, 3D)         fused [Wq^T*scale | Wk^T | Wv^T]
    wfc_ref:  (D, D)          transposed so y = x @ W
    bfc_ref:  (1, D)
    o_ref:    (bt, n_pad, D)
    """
    d = num_heads * dim_head
    rows = bt * n_pad
    cdt = x_ref.dtype                       # compute dtype follows the caller (bf16 stays bf16)

    x2 = x_ref[...].reshape(rows, d)        # free leading-dim merge

    # Fused QKV projection: one tall (rows, D) @ (D, 3D) MXU pass, f32 accumulation,
    # then downcast operands for the attention matmuls.
    qkv = jnp.dot(x2, wqkv_ref[...], preferred_element_type=jnp.float32)
    qkv = qkv.astype(cdt).reshape(bt, n_pad, 3 * d)

    # Key-padding mask (only emitted if the token dim was actually padded).
    if n_valid < n_pad:
        kmask = lax.broadcasted_iota(jnp.int32, (1, 1, n_pad), 2) < n_valid
    else:
        kmask = None

    # Per-head attention, accumulated straight into the output projection:
    #   acc += softmax(q_h k_h^T) v_h @ Wfc[h*Dh:(h+1)*Dh, :]
    acc = jnp.zeros((rows, d), jnp.float32)
    for h in range(num_heads):
        lo = h * dim_head
        q_h = qkv[:, :, lo:lo + dim_head]
        k_h = qkv[:, :, d + lo:d + lo + dim_head]
        v_h = qkv[:, :, 2 * d + lo:2 * d + lo + dim_head]

        # scale already folded into Wq at prep time
        scores = jnp.einsum('bqd,bkd->bqk', q_h, k_h,
                            preferred_element_type=jnp.float32)       # (bt, Np, Np) f32
        if kmask is not None:
            scores = jnp.where(kmask, scores, jnp.float32(-1e30))
        m = jnp.max(scores, axis=-1, keepdims=True)
        e = jnp.exp(scores - m)                                        # f32 softmax stats
        probs = (e * pl.reciprocal(jnp.sum(e, axis=-1, keepdims=True),
                                   approx=True)).astype(cdt)
        ctx = jnp.einsum('bqk,bkd->bqd', probs, v_h,
                         preferred_element_type=jnp.float32)           # (bt, Np, Dh) f32

        acc = acc + jnp.dot(ctx.reshape(rows, dim_head).astype(cdt),
                            wfc_ref[lo:lo + dim_head, :],
                            preferred_element_type=jnp.float32)

    y = acc + bfc_ref[0].astype(jnp.float32)
    o_ref[...] = y.reshape(bt, n_pad, d).astype(o_ref.dtype)


# ----------------------------------------------------------------------------- param prep
def prepare_mha_params(wq, wk, wv, wfc, bfc, *, num_heads: int):
    """One-time parameter prep. Inputs follow PyTorch nn.Linear (out, in) layout.
    Returns (wqkv_t, wfc_t, bfc_2d) with 1/sqrt(dim_head) folded into Wq."""
    dim = wq.shape[0]
    dim_head = dim // num_heads
    scale = 1.0 / (dim_head ** 0.5)
    wqkv_t = jnp.concatenate([wq.T * scale, wk.T, wv.T], axis=1)   # (D, 3D)
    return wqkv_t, jnp.asarray(wfc.T), jnp.asarray(bfc).reshape(1, dim)


# ----------------------------------------------------------------------------- hw heuristics
def _vmem_capacity_bytes():
    try:
        cap = getattr(pltpu.get_tpu_info(), "vmem_capacity_bytes", None)
        if cap:
            return int(cap)
    except Exception:
        pass
    try:
        kind = getattr(jax.devices()[0], "device_kind", "").lower()
    except Exception:
        kind = ""
    return (64 << 20) if "v7" in kind else (128 << 20)


def _num_tensorcores():
    """Dual-TensorCore (megacore-style) chips vs single-TC v5e/v6e."""
    try:
        kind = getattr(jax.devices()[0], "device_kind", "").lower()
        if any(t in kind for t in ("v4", "v5p", "v7")):
            return 2
    except Exception:
        pass
    return 1


def _choose_block_batch(B, n_pad, d, num_heads, itemsize, budget_bytes, num_tc):
    """Largest batch tile bt that divides B, fits the VMEM budget, and (on 2-TC
    chips only) keeps >= 2 grid steps, preferring an even grid length."""
    dh = d // num_heads
    wbytes = (d * 3 * d + d * d + d) * itemsize                # single-buffered weights/bias

    def live_bytes(bt):
        rows = bt * n_pad
        io = 2 * 2 * rows * d * itemsize                       # double-buffered x/out tiles
        qkv = rows * 3 * d * (4 + itemsize)                    # f32 matmul out + cdt copy
        attn = bt * n_pad * n_pad * (2 * 4 + itemsize) * 2     # scores + e (f32) + probs, overlap slack
        ctx = rows * dh * (4 + itemsize)
        acc = rows * d * 4
        return wbytes + io + qkv + attn + ctx + acc

    fits = [bt for bt in range(1, B + 1) if B % bt == 0 and live_bytes(bt) <= budget_bytes]
    if not fits:
        return 1
    if num_tc >= 2 and B >= num_tc:
        multi = [bt for bt in fits if B // bt >= num_tc]
        if multi:
            even = [bt for bt in multi if (B // bt) % num_tc == 0]
            return max(even) if even else max(multi)
    return max(fits)


# ----------------------------------------------------------------------------- wrapper
def multi_head_attention(x, wqkv_t, wfc_t, bfc_2d, *, num_heads: int,
                         block_batch=None):
    """x: (B, N, D); params from prepare_mha_params."""
    B, N, D = x.shape
    dim_head = D // num_heads

    # Lane-dense token dim: 128-multiple for long sequences (full MXU tiles /
    # unmasked stores), 8-sublane multiple otherwise.  Padded keys masked in-kernel.
    n_pad = _round_up(N, 128) if N > 64 else _round_up(N, 8)

    vmem_cap = _vmem_capacity_bytes()
    num_tc = _num_tensorcores()
    vmem_limit = int(min(vmem_cap - (16 << 20), 112 << 20))
    budget = vmem_limit // 2                                    # headroom for compiler temps

    bt = block_batch or _choose_block_batch(
        B, n_pad, D, num_heads, jnp.dtype(x.dtype).itemsize, budget, num_tc)
    assert B % bt == 0

    x_p = x if n_pad == N else jnp.pad(x, ((0, 0), (0, n_pad - N), (0, 0)))

    kernel = functools.partial(_mha_kernel, num_heads=num_heads, dim_head=dim_head,
                               bt=bt, n_pad=n_pad, n_valid=N)

    def _build(use_buffered):
        def inv_spec(shape):
            idx = (lambda g, _r=len(shape): (0,) * _r)
            if use_buffered:
                try:
                    # Grid-invariant weights: no need for a second pipeline buffer.
                    return pl.BlockSpec(shape, idx, pipeline_mode=pl.Buffered(1))
                except (TypeError, AttributeError):
                    pass
            return pl.BlockSpec(shape, idx)

        return pl.pallas_call(
            kernel,
            out_shape=jax.ShapeDtypeStruct((B, n_pad, D), x.dtype),
            grid_spec=pltpu.PrefetchScalarGridSpec(
                num_scalar_prefetch=0,
                grid=(B // bt,),
                in_specs=[
                    pl.BlockSpec((bt, n_pad, D), lambda g: (g, 0, 0)),   # x tile
                    inv_spec(wqkv_t.shape),                              # fused Wqkv^T
                    inv_spec(wfc_t.shape),                               # Wfc^T
                    inv_spec(bfc_2d.shape),                              # b_fc
                ],
                out_specs=pl.BlockSpec((bt, n_pad, D), lambda g: (g, 0, 0)),
            ),
            compiler_params=pltpu.CompilerParams(
                dimension_semantics=("parallel",),
                vmem_limit_bytes=vmem_limit),
        )

    try:
        out = _build(True)(x_p, wqkv_t, wfc_t, bfc_2d)
    except Exception:
        # Fallback for JAX builds where Buffered(1) weight specs don't lower.
        out = _build(False)(x_p, wqkv_t, wfc_t, bfc_2d)

    return out[:, :N, :] if n_pad != N else out


# ----------------------------------------------------------------------------- reference
def _reference(x, wq, wk, wv, wfc, bfc, *, num_heads: int):
    """Pure-JAX reference mirroring the PyTorch forward exactly."""
    B, N, D = x.shape
    dh = D // num_heads
    q = (x @ wq.T).reshape(B, N, num_heads, dh).transpose(0, 2, 1, 3)
    k = (x @ wk.T).reshape(B, N, num_heads, dh).transpose(0, 2, 1, 3)
    v = (x @ wv.T).reshape(B, N, num_heads, dh).transpose(0, 2, 1, 3)
    scores = jnp.einsum('bhnd,bhmd->bhnm', q, k) / (dh ** 0.5)
    probs = jax.nn.softmax(scores, axis=-1)
    out = jnp.einsum('bhnm,bhmd->bhnd', probs, v)
    out = out.transpose(0, 2, 1, 3).reshape(B, N, D)
    return out @ wfc.T + bfc


if __name__ == "__main__":
    # Small shapes consistent with the module: (batch, tokens, embedding dim).
    B, N, D, H = 2, 8, 32, 4

    key = jax.random.PRNGKey(0)
    kx, kq, kk, kv, kf, kb = jax.random.split(key, 6)

    x = jax.random.normal(kx, (B, N, D), dtype=jnp.float32)
    # PyTorch Linear weight layout: (out, in).
    wq = jax.random.normal(kq, (D, D), dtype=jnp.float32) * 0.05
    wk = jax.random.normal(kk, (D, D), dtype=jnp.float32) * 0.05
    wv = jax.random.normal(kv, (D, D), dtype=jnp.float32) * 0.05
    wfc = jax.random.normal(kf, (D, D), dtype=jnp.float32) * 0.05
    bfc = jax.random.normal(kb, (D,), dtype=jnp.float32) * 0.05

    # One-time parameter prep (fused/transposed weights), reused across calls.
    params = prepare_mha_params(wq, wk, wv, wfc, bfc, num_heads=H)

    y = multi_head_attention(x, *params, num_heads=H)
    y = jax.block_until_ready(y)

    y_ref = _reference(x, wq, wk, wv, wfc, bfc, num_heads=H)
    assert y.shape == y_ref.shape
    assert jnp.allclose(y, y_ref, atol=2e-3, rtol=2e-3), "mismatch vs reference"

    print("KERNEL_OK")
</pallas_src>

<mosaic_0001>
module attributes {stable_mosaic.version = 11 : i64} {
  func.func @_mha_kernel(%arg0: i32, %arg1: memref<2x8x32xf32, #tpu.memory_space<vmem>>, %arg2: memref<32x96xf32, #tpu.memory_space<vmem>>, %arg3: memref<32x32xf32, #tpu.memory_space<vmem>>, %arg4: memref<1x32xf32, #tpu.memory_space<vmem>>, %arg5: memref<2x8x32xf32, #tpu.memory_space<vmem>>) attributes {dimension_semantics = [#tpu.dimension_semantics<parallel>], iteration_bounds = array<i64: 1>, scalar_prefetch = 0 : i64, scratch_operands = 0 : i64, tpu.core_type = #tpu.core_type<tc>, window_params = [{transform_indices = @transform_0, window_bounds = array<i64: 2, 8, 32>}, {pipeline_mode = #tpu.pipeline_mode<synchronous>, transform_indices = @transform_1, window_bounds = array<i64: 32, 96>}, {pipeline_mode = #tpu.pipeline_mode<synchronous>, transform_indices = @transform_2, window_bounds = array<i64: 32, 32>}, {pipeline_mode = #tpu.pipeline_mode<synchronous>, transform_indices = @transform_3, window_bounds = array<i64: 1, 32>}, {transform_indices = @transform_4, window_bounds = array<i64: 2, 8, 32>}]} {
    %c0 = arith.constant 0 : index
    %c0_0 = arith.constant 0 : index
    %c0_1 = arith.constant 0 : index
    %0 = vector.load %arg1[%c0, %c0_0, %c0_1] : memref<2x8x32xf32, #tpu.memory_space<vmem>>, vector<2x8x32xf32>
    %1 = vector.shape_cast %0 : vector<2x8x32xf32> to vector<16x32xf32>
    %c0_2 = arith.constant 0 : index
    %c0_3 = arith.constant 0 : index
    %2 = vector.load %arg2[%c0_2, %c0_3] : memref<32x96xf32, #tpu.memory_space<vmem>>, vector<32x96xf32>
    %cst = arith.constant dense<0.000000e+00> : vector<16x96xf32>
    %3 = tpu.matmul %1, %2, %cst {dimension_numbers = #tpu.dot_dimension_numbers<[1], [0], [0], [1], [0, 0, 1, 1], [], []>} : vector<16x32xf32>, vector<32x96xf32>, vector<16x96xf32> -> vector<16x96xf32>
    %4 = vector.shape_cast %3 : vector<16x96xf32> to vector<2x8x96xf32>
    %cst_4 = arith.constant 0.000000e+00 : f32
    %5 = vector.broadcast %cst_4 : f32 to vector<16x32xf32>
    %6 = vector.extract_strided_slice %4 {offsets = [0, 0, 0], sizes = [2, 8, 8], strides = [1, 1, 1]} : vector<2x8x96xf32> to vector<2x8x8xf32>
    %7 = vector.extract_strided_slice %4 {offsets = [0, 0, 32], sizes = [2, 8, 8], strides = [1, 1, 1]} : vector<2x8x96xf32> to vector<2x8x8xf32>
    %8 = vector.extract_strided_slice %4 {offsets = [0, 0, 64], sizes = [2, 8, 8], strides = [1, 1, 1]} : vector<2x8x96xf32> to vector<2x8x8xf32>
    "tpu.trace_start"() <{level = 10 : i32, message = "bqd,bkd->bqk"}> : () -> ()
    %cst_5 = arith.constant dense<0.000000e+00> : vector<2x8x8xf32>
    %9 = tpu.matmul %6, %7, %cst_5 {dimension_numbers = #tpu.dot_dimension_numbers<[2], [2], [1], [1], [0, 0, 0, 1, 1, 1], [0], [0]>} : vector<2x8x8xf32>, vector<2x8x8xf32>, vector<2x8x8xf32> -> vector<2x8x8xf32>
    "tpu.trace_stop"() : () -> ()
    %cst_6 = arith.constant dense<0xFF800000> : vector<2x8xf32>
    %10 = vector.multi_reduction <maximumf>, %9, %cst_6 [2] : vector<2x8x8xf32> to vector<2x8xf32>
    %11 = vector.shape_cast %10 : vector<2x8xf32> to vector<2x8x1xf32>
    %12 = vector.broadcast %11 : vector<2x8x1xf32> to vector<2x8x8xf32>
    %13 = arith.subf %9, %12 : vector<2x8x8xf32>
    %14 = math.exp %13 : vector<2x8x8xf32>
    %cst_7 = arith.constant dense<0.000000e+00> : vector<2x8xf32>
    %15 = vector.multi_reduction <add>, %14, %cst_7 [2] : vector<2x8x8xf32> to vector<2x8xf32>
    %16 = vector.shape_cast %15 : vector<2x8xf32> to vector<2x8x1xf32>
    %17 = tpu.reciprocal %16 {approx = true} : vector<2x8x1xf32> -> vector<2x8x1xf32>
    %18 = vector.broadcast %17 : vector<2x8x1xf32> to vector<2x8x8xf32>
    %19 = arith.mulf %14, %18 : vector<2x8x8xf32>
    "tpu.trace_start"() <{level = 10 : i32, message = "bqk,bkd->bqd"}> : () -> ()
    %cst_8 = arith.constant dense<0.000000e+00> : vector<2x8x8xf32>
    %20 = tpu.matmul %19, %8, %cst_8 {dimension_numbers = #tpu.dot_dimension_numbers<[2], [1], [1], [2], [0, 0, 0, 1, 1, 2], [0], [0]>} : vector<2x8x8xf32>, vector<2x8x8xf32>, vector<2x8x8xf32> -> vector<2x8x8xf32>
    "tpu.trace_stop"() : () -> ()
    %21 = vector.shape_cast %20 : vector<2x8x8xf32> to vector<16x8xf32>
    %c0_9 = arith.constant 0 : index
    %c0_10 = arith.constant 0 : index
    %22 = vector.load %arg3[%c0_9, %c0_10] : memref<32x32xf32, #tpu.memory_space<vmem>>, vector<8x32xf32>
    %cst_11 = arith.constant dense<0.000000e+00> : vector<16x32xf32>
    %23 = tpu.matmul %21, %22, %cst_11 {dimension_numbers = #tpu.dot_dimension_numbers<[1], [0], [0], [1], [0, 0, 1, 1], [], []>} : vector<16x8xf32>, vector<8x32xf32>, vector<16x32xf32> -> vector<16x32xf32>
    %24 = arith.addf %5, %23 : vector<16x32xf32>
    %25 = vector.extract_strided_slice %4 {offsets = [0, 0, 8], sizes = [2, 8, 8], strides = [1, 1, 1]} : vector<2x8x96xf32> to vector<2x8x8xf32>
    %26 = vector.extract_strided_slice %4 {offsets = [0, 0, 40], sizes = [2, 8, 8], strides = [1, 1, 1]} : vector<2x8x96xf32> to vector<2x8x8xf32>
    %27 = vector.extract_strided_slice %4 {offsets = [0, 0, 72], sizes = [2, 8, 8], strides = [1, 1, 1]} : vector<2x8x96xf32> to vector<2x8x8xf32>
    "tpu.trace_start"() <{level = 10 : i32, message = "bqd,bkd->bqk"}> : () -> ()
    %cst_12 = arith.constant dense<0.000000e+00> : vector<2x8x8xf32>
    %28 = tpu.matmul %25, %26, %cst_12 {dimension_numbers = #tpu.dot_dimension_numbers<[2], [2], [1], [1], [0, 0, 0, 1, 1, 1], [0], [0]>} : vector<2x8x8xf32>, vector<2x8x8xf32>, vector<2x8x8xf32> -> vector<2x8x8xf32>
    "tpu.trace_stop"() : () -> ()
    %cst_13 = arith.constant dense<0xFF800000> : vector<2x8xf32>
    %29 = vector.multi_reduction <maximumf>, %28, %cst_13 [2] : vector<2x8x8xf32> to vector<2x8xf32>
    %30 = vector.shape_cast %29 : vector<2x8xf32> to vector<2x8x1xf32>
    %31 = vector.broadcast %30 : vector<2x8x1xf32> to vector<2x8x8xf32>
    %32 = arith.subf %28, %31 : vector<2x8x8xf32>
    %33 = math.exp %32 : vector<2x8x8xf32>
    %cst_14 = arith.constant dense<0.000000e+00> : vector<2x8xf32>
    %34 = vector.multi_reduction <add>, %33, %cst_14 [2] : vector<2x8x8xf32> to vector<2x8xf32>
    %35 = vector.shape_cast %34 : vector<2x8xf32> to vector<2x8x1xf32>
    %36 = tpu.reciprocal %35 {approx = true} : vector<2x8x1xf32> -> vector<2x8x1xf32>
    %37 = vector.broadcast %36 : vector<2x8x1xf32> to vector<2x8x8xf32>
    %38 = arith.mulf %33, %37 : vector<2x8x8xf32>
    "tpu.trace_start"() <{level = 10 : i32, message = "bqk,bkd->bqd"}> : () -> ()
    %cst_15 = arith.constant dense<0.000000e+00> : vector<2x8x8xf32>
    %39 = tpu.matmul %38, %27, %cst_15 {dimension_numbers = #tpu.dot_dimension_numbers<[2], [1], [1], [2], [0, 0, 0, 1, 1, 2], [0], [0]>} : vector<2x8x8xf32>, vector<2x8x8xf32>, vector<2x8x8xf32> -> vector<2x8x8xf32>
    "tpu.trace_stop"() : () -> ()
    %40 = vector.shape_cast %39 : vector<2x8x8xf32> to vector<16x8xf32>
    %c8 = arith.constant 8 : index
    %c0_16 = arith.constant 0 : index
    %41 = vector.load %arg3[%c8, %c0_16] : memref<32x32xf32, #tpu.memory_space<vmem>>, vector<8x32xf32>
    %cst_17 = arith.constant dense<0.000000e+00> : vector<16x32xf32>
    %42 = tpu.matmul %40, %41, %cst_17 {dimension_numbers = #tpu.dot_dimension_numbers<[1], [0], [0], [1], [0, 0, 1, 1], [], []>} : vector<16x8xf32>, vector<8x32xf32>, vector<16x32xf32> -> vector<16x32xf32>
    %43 = arith.addf %24, %42 : vector<16x32xf32>
    %44 = vector.extract_strided_slice %4 {offsets = [0, 0, 16], sizes = [2, 8, 8], strides = [1, 1, 1]} : vector<2x8x96xf32> to vector<2x8x8xf32>
    %45 = vector.extract_strided_slice %4 {offsets = [0, 0, 48], sizes = [2, 8, 8], strides = [1, 1, 1]} : vector<2x8x96xf32> to vector<2x8x8xf32>
    %46 = vector.extract_strided_slice %4 {offsets = [0, 0, 80], sizes = [2, 8, 8], strides = [1, 1, 1]} : vector<2x8x96xf32> to vector<2x8x8xf32>
    "tpu.trace_start"() <{level = 10 : i32, message = "bqd,bkd->bqk"}> : () -> ()
    %cst_18 = arith.constant dense<0.000000e+00> : vector<2x8x8xf32>
    %47 = tpu.matmul %44, %45, %cst_18 {dimension_numbers = #tpu.dot_dimension_numbers<[2], [2], [1], [1], [0, 0, 0, 1, 1, 1], [0], [0]>} : vector<2x8x8xf32>, vector<2x8x8xf32>, vector<2x8x8xf32> -> vector<2x8x8xf32>
    "tpu.trace_stop"() : () -> ()
    %cst_19 = arith.constant dense<0xFF800000> : vector<2x8xf32>
    %48 = vector.multi_reduction <maximumf>, %47, %cst_19 [2] : vector<2x8x8xf32> to vector<2x8xf32>
    %49 = vector.shape_cast %48 : vector<2x8xf32> to vector<2x8x1xf32>
    %50 = vector.broadcast %49 : vector<2x8x1xf32> to vector<2x8x8xf32>
    %51 = arith.subf %47, %50 : vector<2x8x8xf32>
    %52 = math.exp %51 : vector<2x8x8xf32>
    %cst_20 = arith.constant dense<0.000000e+00> : vector<2x8xf32>
    %53 = vector.multi_reduction <add>, %52, %cst_20 [2] : vector<2x8x8xf32> to vector<2x8xf32>
    %54 = vector.shape_cast %53 : vector<2x8xf32> to vector<2x8x1xf32>
    %55 = tpu.reciprocal %54 {approx = true} : vector<2x8x1xf32> -> vector<2x8x1xf32>
    %56 = vector.broadcast %55 : vector<2x8x1xf32> to vector<2x8x8xf32>
    %57 = arith.mulf %52, %56 : vector<2x8x8xf32>
    "tpu.trace_start"() <{level = 10 : i32, message = "bqk,bkd->bqd"}> : () -> ()
    %cst_21 = arith.constant dense<0.000000e+00> : vector<2x8x8xf32>
    %58 = tpu.matmul %57, %46, %cst_21 {dimension_numbers = #tpu.dot_dimension_numbers<[2], [1], [1], [2], [0, 0, 0, 1, 1, 2], [0], [0]>} : vector<2x8x8xf32>, vector<2x8x8xf32>, vector<2x8x8xf32> -> vector<2x8x8xf32>
    "tpu.trace_stop"() : () -> ()
    %59 = vector.shape_cast %58 : vector<2x8x8xf32> to vector<16x8xf32>
    %c16 = arith.constant 16 : index
    %c0_22 = arith.constant 0 : index
    %60 = vector.load %arg3[%c16, %c0_22] : memref<32x32xf32, #tpu.memory_space<vmem>>, vector<8x32xf32>
    %cst_23 = arith.constant dense<0.000000e+00> : vector<16x32xf32>
    %61 = tpu.matmul %59, %60, %cst_23 {dimension_numbers = #tpu.dot_dimension_numbers<[1], [0], [0], [1], [0, 0, 1, 1], [], []>} : vector<16x8xf32>, vector<8x32xf32>, vector<16x32xf32> -> vector<16x32xf32>
    %62 = arith.addf %43, %61 : vector<16x32xf32>
    %63 = vector.extract_strided_slice %4 {offsets = [0, 0, 24], sizes = [2, 8, 8], strides = [1, 1, 1]} : vector<2x8x96xf32> to vector<2x8x8xf32>
    %64 = vector.extract_strided_slice %4 {offsets = [0, 0, 56], sizes = [2, 8, 8], strides = [1, 1, 1]} : vector<2x8x96xf32> to vector<2x8x8xf32>
    %65 = vector.extract_strided_slice %4 {offsets = [0, 0, 88], sizes = [2, 8, 8], strides = [1, 1, 1]} : vector<2x8x96xf32> to vector<2x8x8xf32>
    "tpu.trace_start"() <{level = 10 : i32, message = "bqd,bkd->bqk"}> : () -> ()
    %cst_24 = arith.constant dense<0.000000e+00> : vector<2x8x8xf32>
    %66 = tpu.matmul %63, %64, %cst_24 {dimension_numbers = #tpu.dot_dimension_numbers<[2], [2], [1], [1], [0, 0, 0, 1, 1, 1], [0], [0]>} : vector<2x8x8xf32>, vector<2x8x8xf32>, vector<2x8x8xf32> -> vector<2x8x8xf32>
    "tpu.trace_stop"() : () -> ()
    %cst_25 = arith.constant dense<0xFF800000> : vector<2x8xf32>
    %67 = vector.multi_reduction <maximumf>, %66, %cst_25 [2] : vector<2x8x8xf32> to vector<2x8xf32>
    %68 = vector.shape_cast %67 : vector<2x8xf32> to vector<2x8x1xf32>
    %69 = vector.broadcast %68 : vector<2x8x1xf32> to vector<2x8x8xf32>
    %70 = arith.subf %66, %69 : vector<2x8x8xf32>
    %71 = math.exp %70 : vector<2x8x8xf32>
    %cst_26 = arith.constant dense<0.000000e+00> : vector<2x8xf32>
    %72 = vector.multi_reduction <add>, %71, %cst_26 [2] : vector<2x8x8xf32> to vector<2x8xf32>
    %73 = vector.shape_cast %72 : vector<2x8xf32> to vector<2x8x1xf32>
    %74 = tpu.reciprocal %73 {approx = true} : vector<2x8x1xf32> -> vector<2x8x1xf32>
    %75 = vector.broadcast %74 : vector<2x8x1xf32> to vector<2x8x8xf32>
    %76 = arith.mulf %71, %75 : vector<2x8x8xf32>
    "tpu.trace_start"() <{level = 10 : i32, message = "bqk,bkd->bqd"}> : () -> ()
    %cst_27 = arith.constant dense<0.000000e+00> : vector<2x8x8xf32>
    %77 = tpu.matmul %76, %65, %cst_27 {dimension_numbers = #tpu.dot_dimension_numbers<[2], [1], [1], [2], [0, 0, 0, 1, 1, 2], [0], [0]>} : vector<2x8x8xf32>, vector<2x8x8xf32>, vector<2x8x8xf32> -> vector<2x8x8xf32>
    "tpu.trace_stop"() : () -> ()
    %78 = vector.shape_cast %77 : vector<2x8x8xf32> to vector<16x8xf32>
    %c24 = arith.constant 24 : index
    %c0_28 = arith.constant 0 : index
    %79 = vector.load %arg3[%c24, %c0_28] : memref<32x32xf32, #tpu.memory_space<vmem>>, vector<8x32xf32>
    %cst_29 = arith.constant dense<0.000000e+00> : vector<16x32xf32>
    %80 = tpu.matmul %78, %79, %cst_29 {dimension_numbers = #tpu.dot_dimension_numbers<[1], [0], [0], [1], [0, 0, 1, 1], [], []>} : vector<16x8xf32>, vector<8x32xf32>, vector<16x32xf32> -> vector<16x32xf32>
    %81 = arith.addf %62, %80 : vector<16x32xf32>
    %c0_30 = arith.constant 0 : index
    %c0_31 = arith.constant 0 : index
    %82 = vector.load %arg4[%c0_30, %c0_31] : memref<1x32xf32, #tpu.memory_space<vmem>>, vector<1x32xf32>
    %83 = vector.shape_cast %82 : vector<1x32xf32> to vector<32xf32>
    %84 = vector.shape_cast %83 : vector<32xf32> to vector<1x32xf32>
    %85 = vector.broadcast %84 : vector<1x32xf32> to vector<16x32xf32>
    %86 = arith.addf %81, %85 : vector<16x32xf32>
    %87 = vector.shape_cast %86 : vector<16x32xf32> to vector<2x8x32xf32>
    %c0_32 = arith.constant 0 : index
    %c0_33 = arith.constant 0 : index
    %c0_34 = arith.constant 0 : index
    %88 = vector.load %arg5[%c0_32, %c0_33, %c0_34] : memref<2x8x32xf32, #tpu.memory_space<vmem>>, vector<2x8x32xf32>
    tpu.vector_store %arg5[%c0_32, %c0_33, %c0_34], %87 {strides = array<i32>} : memref<2x8x32xf32, #tpu.memory_space<vmem>>, vector<2x8x32xf32>,
    return
  }
  func.func @transform_0(%arg0: i32) -> (i32, i32, i32) {
    %c0_i32 = arith.constant 0 : i32
    %c0_i32_0 = arith.constant 0 : i32
    %c0_i32_1 = arith.constant 0 : i32
    return %arg0, %c0_i32, %c0_i32_0 : i32, i32, i32
  }
  func.func @transform_1(%arg0: i32) -> (i32, i32) {
    %c0_i32 = arith.constant 0 : i32
    %c0_i32_0 = arith.constant 0 : i32
    %c0_i32_1 = arith.constant 0 : i32
    return %c0_i32, %c0_i32_0 : i32, i32
  }
  func.func @transform_2(%arg0: i32) -> (i32, i32) {
    %c0_i32 = arith.constant 0 : i32
    %c0_i32_0 = arith.constant 0 : i32
    %c0_i32_1 = arith.constant 0 : i32
    return %c0_i32, %c0_i32_0 : i32, i32
  }
  func.func @transform_3(%arg0: i32) -> (i32, i32) {
    %c0_i32 = arith.constant 0 : i32
    %c0_i32_0 = arith.constant 0 : i32
    %c0_i32_1 = arith.constant 0 : i32
    return %c0_i32, %c0_i32_0 : i32, i32
  }
  func.func @transform_4(%arg0: i32) -> (i32, i32, i32) {
    %c0_i32 = arith.constant 0 : i32
    %c0_i32_0 = arith.constant 0 : i32
    %c0_i32_1 = arith.constant 0 : i32
    return %arg0, %c0_i32, %c0_i32_0 : i32, i32, i32
  }
}

module attributes {stable_mosaic.version = 11 : i64} {
  func.func @_mha_kernel(%arg0: i32, %arg1: memref<2x8x32xf32, #tpu.memory_space<vmem>>, %arg2: memref<32x96xf32, #tpu.memory_space<vmem>>, %arg3: memref<32x32xf32, #tpu.memory_space<vmem>>, %arg4: memref<1x32xf32, #tpu.memory_space<vmem>>, %arg5: memref<2x8x32xf32, #tpu.memory_space<vmem>>) attributes {dimension_semantics = [#tpu.dimension_semantics<parallel>], iteration_bounds = array<i64: 1>, scalar_prefetch = 0 : i64, scratch_operands = 0 : i64, tpu.core_type = #tpu.core_type<tc>, window_params = [{transform_indices = @transform_0, window_bounds = array<i64: 2, 8, 32>}, {pipeline_mode = #tpu.pipeline_mode<synchronous>, transform_indices = @transform_1, window_bounds = array<i64: 32, 96>}, {pipeline_mode = #tpu.pipeline_mode<synchronous>, transform_indices = @transform_2, window_bounds = array<i64: 32, 32>}, {pipeline_mode = #tpu.pipeline_mode<synchronous>, transform_indices = @transform_3, window_bounds = array<i64: 1, 32>}, {transform_indices = @transform_4, window_bounds = array<i64: 2, 8, 32>}]} {
    %c0 = arith.constant 0 : index
    %c0_0 = arith.constant 0 : index
    %c0_1 = arith.constant 0 : index
    %0 = vector.load %arg1[%c0, %c0_0, %c0_1] : memref<2x8x32xf32, #tpu.memory_space<vmem>>, vector<2x8x32xf32>
    %1 = vector.shape_cast %0 : vector<2x8x32xf32> to vector<16x32xf32>
    %c0_2 = arith.constant 0 : index
    %c0_3 = arith.constant 0 : index
    %2 = vector.load %arg2[%c0_2, %c0_3] : memref<32x96xf32, #tpu.memory_space<vmem>>, vector<32x96xf32>
    %cst = arith.constant dense<0.000000e+00> : vector<16x96xf32>
    %3 = tpu.matmul %1, %2, %cst {dimension_numbers = #tpu.dot_dimension_numbers<[1], [0], [0], [1], [0, 0, 1, 1], [], []>} : vector<16x32xf32>, vector<32x96xf32>, vector<16x96xf32> -> vector<16x96xf32>
    %4 = vector.shape_cast %3 : vector<16x96xf32> to vector<2x8x96xf32>
    %cst_4 = arith.constant 0.000000e+00 : f32
    %5 = vector.broadcast %cst_4 : f32 to vector<16x32xf32>
    %6 = vector.extract_strided_slice %4 {offsets = [0, 0, 0], sizes = [2, 8, 8], strides = [1, 1, 1]} : vector<2x8x96xf32> to vector<2x8x8xf32>
    %7 = vector.extract_strided_slice %4 {offsets = [0, 0, 32], sizes = [2, 8, 8], strides = [1, 1, 1]} : vector<2x8x96xf32> to vector<2x8x8xf32>
    %8 = vector.extract_strided_slice %4 {offsets = [0, 0, 64], sizes = [2, 8, 8], strides = [1, 1, 1]} : vector<2x8x96xf32> to vector<2x8x8xf32>
    "tpu.trace_start"() <{level = 10 : i32, message = "bqd,bkd->bqk"}> : () -> ()
    %cst_5 = arith.constant dense<0.000000e+00> : vector<2x8x8xf32>
    %9 = tpu.matmul %6, %7, %cst_5 {dimension_numbers = #tpu.dot_dimension_numbers<[2], [2], [1], [1], [0, 0, 0, 1, 1, 1], [0], [0]>} : vector<2x8x8xf32>, vector<2x8x8xf32>, vector<2x8x8xf32> -> vector<2x8x8xf32>
    "tpu.trace_stop"() : () -> ()
    %cst_6 = arith.constant dense<0xFF800000> : vector<2x8xf32>
    %10 = vector.multi_reduction <maximumf>, %9, %cst_6 [2] : vector<2x8x8xf32> to vector<2x8xf32>
    %11 = vector.shape_cast %10 : vector<2x8xf32> to vector<2x8x1xf32>
    %12 = vector.broadcast %11 : vector<2x8x1xf32> to vector<2x8x8xf32>
    %13 = arith.subf %9, %12 : vector<2x8x8xf32>
    %14 = math.exp %13 : vector<2x8x8xf32>
    %cst_7 = arith.constant dense<0.000000e+00> : vector<2x8xf32>
    %15 = vector.multi_reduction <add>, %14, %cst_7 [2] : vector<2x8x8xf32> to vector<2x8xf32>
    %16 = vector.shape_cast %15 : vector<2x8xf32> to vector<2x8x1xf32>
    %17 = tpu.reciprocal %16 {approx = true} : vector<2x8x1xf32> -> vector<2x8x1xf32>
    %18 = vector.broadcast %17 : vector<2x8x1xf32> to vector<2x8x8xf32>
    %19 = arith.mulf %14, %18 : vector<2x8x8xf32>
    "tpu.trace_start"() <{level = 10 : i32, message = "bqk,bkd->bqd"}> : () -> ()
    %cst_8 = arith.constant dense<0.000000e+00> : vector<2x8x8xf32>
    %20 = tpu.matmul %19, %8, %cst_8 {dimension_numbers = #tpu.dot_dimension_numbers<[2], [1], [1], [2], [0, 0, 0, 1, 1, 2], [0], [0]>} : vector<2x8x8xf32>, vector<2x8x8xf32>, vector<2x8x8xf32> -> vector<2x8x8xf32>
    "tpu.trace_stop"() : () -> ()
    %21 = vector.shape_cast %20 : vector<2x8x8xf32> to vector<16x8xf32>
    %c0_9 = arith.constant 0 : index
    %c0_10 = arith.constant 0 : index
    %22 = vector.load %arg3[%c0_9, %c0_10] : memref<32x32xf32, #tpu.memory_space<vmem>>, vector<8x32xf32>
    %cst_11 = arith.constant dense<0.000000e+00> : vector<16x32xf32>
    %23 = tpu.matmul %21, %22, %cst_11 {dimension_numbers = #tpu.dot_dimension_numbers<[1], [0], [0], [1], [0, 0, 1, 1], [], []>} : vector<16x8xf32>, vector<8x32xf32>, vector<16x32xf32> -> vector<16x32xf32>
    %24 = arith.addf %5, %23 : vector<16x32xf32>
    %25 = vector.extract_strided_slice %4 {offsets = [0, 0, 8], sizes = [2, 8, 8], strides = [1, 1, 1]} : vector<2x8x96xf32> to vector<2x8x8xf32>
    %26 = vector.extract_strided_slice %4 {offsets = [0, 0, 40], sizes = [2, 8, 8], strides = [1, 1, 1]} : vector<2x8x96xf32> to vector<2x8x8xf32>
    %27 = vector.extract_strided_slice %4 {offsets = [0, 0, 72], sizes = [2, 8, 8], strides = [1, 1, 1]} : vector<2x8x96xf32> to vector<2x8x8xf32>
    "tpu.trace_start"() <{level = 10 : i32, message = "bqd,bkd->bqk"}> : () -> ()
    %cst_12 = arith.constant dense<0.000000e+00> : vector<2x8x8xf32>
    %28 = tpu.matmul %25, %26, %cst_12 {dimension_numbers = #tpu.dot_dimension_numbers<[2], [2], [1], [1], [0, 0, 0, 1, 1, 1], [0], [0]>} : vector<2x8x8xf32>, vector<2x8x8xf32>, vector<2x8x8xf32> -> vector<2x8x8xf32>
    "tpu.trace_stop"() : () -> ()
    %cst_13 = arith.constant dense<0xFF800000> : vector<2x8xf32>
    %29 = vector.multi_reduction <maximumf>, %28, %cst_13 [2] : vector<2x8x8xf32> to vector<2x8xf32>
    %30 = vector.shape_cast %29 : vector<2x8xf32> to vector<2x8x1xf32>
    %31 = vector.broadcast %30 : vector<2x8x1xf32> to vector<2x8x8xf32>
    %32 = arith.subf %28, %31 : vector<2x8x8xf32>
    %33 = math.exp %32 : vector<2x8x8xf32>
    %cst_14 = arith.constant dense<0.000000e+00> : vector<2x8xf32>
    %34 = vector.multi_reduction <add>, %33, %cst_14 [2] : vector<2x8x8xf32> to vector<2x8xf32>
    %35 = vector.shape_cast %34 : vector<2x8xf32> to vector<2x8x1xf32>
    %36 = tpu.reciprocal %35 {approx = true} : vector<2x8x1xf32> -> vector<2x8x1xf32>
    %37 = vector.broadcast %36 : vector<2x8x1xf32> to vector<2x8x8xf32>
    %38 = arith.mulf %33, %37 : vector<2x8x8xf32>
    "tpu.trace_start"() <{level = 10 : i32, message = "bqk,bkd->bqd"}> : () -> ()
    %cst_15 = arith.constant dense<0.000000e+00> : vector<2x8x8xf32>
    %39 = tpu.matmul %38, %27, %cst_15 {dimension_numbers = #tpu.dot_dimension_numbers<[2], [1], [1], [2], [0, 0, 0, 1, 1, 2], [0], [0]>} : vector<2x8x8xf32>, vector<2x8x8xf32>, vector<2x8x8xf32> -> vector<2x8x8xf32>
    "tpu.trace_stop"() : () -> ()
    %40 = vector.shape_cast %39 : vector<2x8x8xf32> to vector<16x8xf32>
    %c8 = arith.constant 8 : index
    %c0_16 = arith.constant 0 : index
    %41 = vector.load %arg3[%c8, %c0_16] : memref<32x32xf32, #tpu.memory_space<vmem>>, vector<8x32xf32>
    %cst_17 = arith.constant dense<0.000000e+00> : vector<16x32xf32>
    %42 = tpu.matmul %40, %41, %cst_17 {dimension_numbers = #tpu.dot_dimension_numbers<[1], [0], [0], [1], [0, 0, 1, 1], [], []>} : vector<16x8xf32>, vector<8x32xf32>, vector<16x32xf32> -> vector<16x32xf32>
    %43 = arith.addf %24, %42 : vector<16x32xf32>
    %44 = vector.extract_strided_slice %4 {offsets = [0, 0, 16], sizes = [2, 8, 8], strides = [1, 1, 1]} : vector<2x8x96xf32> to vector<2x8x8xf32>
    %45 = vector.extract_strided_slice %4 {offsets = [0, 0, 48], sizes = [2, 8, 8], strides = [1, 1, 1]} : vector<2x8x96xf32> to vector<2x8x8xf32>
    %46 = vector.extract_strided_slice %4 {offsets = [0, 0, 80], sizes = [2, 8, 8], strides = [1, 1, 1]} : vector<2x8x96xf32> to vector<2x8x8xf32>
    "tpu.trace_start"() <{level = 10 : i32, message = "bqd,bkd->bqk"}> : () -> ()
    %cst_18 = arith.constant dense<0.000000e+00> : vector<2x8x8xf32>
    %47 = tpu.matmul %44, %45, %cst_18 {dimension_numbers = #tpu.dot_dimension_numbers<[2], [2], [1], [1], [0, 0, 0, 1, 1, 1], [0], [0]>} : vector<2x8x8xf32>, vector<2x8x8xf32>, vector<2x8x8xf32> -> vector<2x8x8xf32>
    "tpu.trace_stop"() : () -> ()
    %cst_19 = arith.constant dense<0xFF800000> : vector<2x8xf32>
    %48 = vector.multi_reduction <maximumf>, %47, %cst_19 [2] : vector<2x8x8xf32> to vector<2x8xf32>
    %49 = vector.shape_cast %48 : vector<2x8xf32> to vector<2x8x1xf32>
    %50 = vector.broadcast %49 : vector<2x8x1xf32> to vector<2x8x8xf32>
    %51 = arith.subf %47, %50 : vector<2x8x8xf32>
    %52 = math.exp %51 : vector<2x8x8xf32>
    %cst_20 = arith.constant dense<0.000000e+00> : vector<2x8xf32>
    %53 = vector.multi_reduction <add>, %52, %cst_20 [2] : vector<2x8x8xf32> to vector<2x8xf32>
    %54 = vector.shape_cast %53 : vector<2x8xf32> to vector<2x8x1xf32>
    %55 = tpu.reciprocal %54 {approx = true} : vector<2x8x1xf32> -> vector<2x8x1xf32>
    %56 = vector.broadcast %55 : vector<2x8x1xf32> to vector<2x8x8xf32>
    %57 = arith.mulf %52, %56 : vector<2x8x8xf32>
    "tpu.trace_start"() <{level = 10 : i32, message = "bqk,bkd->bqd"}> : () -> ()
    %cst_21 = arith.constant dense<0.000000e+00> : vector<2x8x8xf32>
    %58 = tpu.matmul %57, %46, %cst_21 {dimension_numbers = #tpu.dot_dimension_numbers<[2], [1], [1], [2], [0, 0, 0, 1, 1, 2], [0], [0]>} : vector<2x8x8xf32>, vector<2x8x8xf32>, vector<2x8x8xf32> -> vector<2x8x8xf32>
    "tpu.trace_stop"() : () -> ()
    %59 = vector.shape_cast %58 : vector<2x8x8xf32> to vector<16x8xf32>
    %c16 = arith.constant 16 : index
    %c0_22 = arith.constant 0 : index
    %60 = vector.load %arg3[%c16, %c0_22] : memref<32x32xf32, #tpu.memory_space<vmem>>, vector<8x32xf32>
    %cst_23 = arith.constant dense<0.000000e+00> : vector<16x32xf32>
    %61 = tpu.matmul %59, %60, %cst_23 {dimension_numbers = #tpu.dot_dimension_numbers<[1], [0], [0], [1], [0, 0, 1, 1], [], []>} : vector<16x8xf32>, vector<8x32xf32>, vector<16x32xf32> -> vector<16x32xf32>
    %62 = arith.addf %43, %61 : vector<16x32xf32>
    %63 = vector.extract_strided_slice %4 {offsets = [0, 0, 24], sizes = [2, 8, 8], strides = [1, 1, 1]} : vector<2x8x96xf32> to vector<2x8x8xf32>
    %64 = vector.extract_strided_slice %4 {offsets = [0, 0, 56], sizes = [2, 8, 8], strides = [1, 1, 1]} : vector<2x8x96xf32> to vector<2x8x8xf32>
    %65 = vector.extract_strided_slice %4 {offsets = [0, 0, 88], sizes = [2, 8, 8], strides = [1, 1, 1]} : vector<2x8x96xf32> to vector<2x8x8xf32>
    "tpu.trace_start"() <{level = 10 : i32, message = "bqd,bkd->bqk"}> : () -> ()
    %cst_24 = arith.constant dense<0.000000e+00> : vector<2x8x8xf32>
    %66 = tpu.matmul %63, %64, %cst_24 {dimension_numbers = #tpu.dot_dimension_numbers<[2], [2], [1], [1], [0, 0, 0, 1, 1, 1], [0], [0]>} : vector<2x8x8xf32>, vector<2x8x8xf32>, vector<2x8x8xf32> -> vector<2x8x8xf32>
    "tpu.trace_stop"() : () -> ()
    %cst_25 = arith.constant dense<0xFF800000> : vector<2x8xf32>
    %67 = vector.multi_reduction <maximumf>, %66, %cst_25 [2] : vector<2x8x8xf32> to vector<2x8xf32>
    %68 = vector.shape_cast %67 : vector<2x8xf32> to vector<2x8x1xf32>
    %69 = vector.broadcast %68 : vector<2x8x1xf32> to vector<2x8x8xf32>
    %70 = arith.subf %66, %69 : vector<2x8x8xf32>
    %71 = math.exp %70 : vector<2x8x8xf32>
    %cst_26 = arith.constant dense<0.000000e+00> : vector<2x8xf32>
    %72 = vector.multi_reduction <add>, %71, %cst_26 [2] : vector<2x8x8xf32> to vector<2x8xf32>
    %73 = vector.shape_cast %72 : vector<2x8xf32> to vector<2x8x1xf32>
    %74 = tpu.reciprocal %73 {approx = true} : vector<2x8x1xf32> -> vector<2x8x1xf32>
    %75 = vector.broadcast %74 : vector<2x8x1xf32> to vector<2x8x8xf32>
    %76 = arith.mulf %71, %75 : vector<2x8x8xf32>
    "tpu.trace_start"() <{level = 10 : i32, message = "bqk,bkd->bqd"}> : () -> ()
    %cst_27 = arith.constant dense<0.000000e+00> : vector<2x8x8xf32>
    %77 = tpu.matmul %76, %65, %cst_27 {dimension_numbers = #tpu.dot_dimension_numbers<[2], [1], [1], [2], [0, 0, 0, 1, 1, 2], [0], [0]>} : vector<2x8x8xf32>, vector<2x8x8xf32>, vector<2x8x8xf32> -> vector<2x8x8xf32>
    "tpu.trace_stop"() : () -> ()
    %78 = vector.shape_cast %77 : vector<2x8x8xf32> to vector<16x8xf32>
    %c24 = arith.constant 24 : index
    %c0_28 = arith.constant 0 : index
    %79 = vector.load %arg3[%c24, %c0_28] : memref<32x32xf32, #tpu.memory_space<vmem>>, vector<8x32xf32>
    %cst_29 = arith.constant dense<0.000000e+00> : vector<16x32xf32>
    %80 = tpu.matmul %78, %79, %cst_29 {dimension_numbers = #tpu.dot_dimension_numbers<[1], [0], [0], [1], [0, 0, 1, 1], [], []>} : vector<16x8xf32>, vector<8x32xf32>, vector<16x32xf32> -> vector<16x32xf32>
    %81 = arith.addf %62, %80 : vector<16x32xf32>
    %c0_30 = arith.constant 0 : index
    %c0_31 = arith.constant 0 : index
    %82 = vector.load %arg4[%c0_30, %c0_31] : memref<1x32xf32, #tpu.memory_space<vmem>>, vector<1x32xf32>
    %83 = vector.shape_cast %82 : vector<1x32xf32> to vector<32xf32>
    %84 = vector.shape_cast %83 : vector<32xf32> to vector<1x32xf32>
    %85 = vector.broadcast %84 : vector<1x32xf32> to vector<16x32xf32>
    %86 = arith.addf %81, %85 : vector<16x32xf32>
    %87 = vector.shape_cast %86 : vector<16x32xf32> to vector<2x8x32xf32>
    %c0_32 = arith.constant 0 : index
    %c0_33 = arith.constant 0 : index
    %c0_34 = arith.constant 0 : index
    %88 = vector.load %arg5[%c0_32, %c0_33, %c0_34] : memref<2x8x32xf32, #tpu.memory_space<vmem>>, vector<2x8x32xf32>
    tpu.vector_store %arg5[%c0_32, %c0_33, %c0_34], %87 {strides = array<i32>} : memref<2x8x32xf32, #tpu.memory_space<vmem>>, vector<2x8x32xf32>,
    return
  }
  func.func @transform_0(%arg0: i32) -> (i32, i32, i32) {
    %c0_i32 = arith.constant 0 : i32
    %c0_i32_0 = arith.constant 0 : i32
    %c0_i32_1 = arith.constant 0 : i32
    return %arg0, %c0_i32, %c0_i32_0 : i32, i32, i32
  }
  func.func @transform_1(%arg0: i32) -> (i32, i32) {
    %c0_i32 = arith.constant 0 : i32
    %c0_i32_0 = arith.constant 0 : i32
    %c0_i32_1 = arith.constant 0 : i32
    return %c0_i32, %c0_i32_0 : i32, i32
  }
  func.func @transform_2(%arg0: i32) -> (i32, i32) {
    %c0_i32 = arith.constant 0 : i32
    %c0_i32_0 = arith.constant 0 : i32
    %c0_i32_1 = arith.constant 0 : i32
    return %c0_i32, %c0_i32_0 : i32, i32
  }
  func.func @transform_3(%arg0: i32) -> (i32, i32) {
    %c0_i32 = arith.constant 0 : i32
    %c0_i32_0 = arith.constant 0 : i32
    %c0_i32_1 = arith.constant 0 : i32
    return %c0_i32, %c0_i32_0 : i32, i32
  }
  func.func @transform_4(%arg0: i32) -> (i32, i32, i32) {
    %c0_i32 = arith.constant 0 : i32
    %c0_i32_0 = arith.constant 0 : i32
    %c0_i32_1 = arith.constant 0 : i32
    return %arg0, %c0_i32, %c0_i32_0 : i32, i32, i32
  }
}

</mosaic_0001>

<bundles_post_ra>
// kernel: tpu_custom_call.1
= control target key start
LH: loop header
LB: loop body
LE: loop exit
PB: predicated region body
PF: predicated region fallthrough
CT: control target
= control target key end

     0   :  { %9 = vsyncpa [#allocation3], 0  ;;  %s2482_s0 = inlined_call_operand.hbm [shape: f32[2,8,32], index: 0, kind: input, shape index: {}]   ;;  %s2483_s1 = inlined_call_operand.hbm [shape: f32[32,96], index: 1, kind: input, shape index: {}]   ;;  %s2484_s2 = inlined_call_operand.hbm [shape: f32[32,32], index: 2, kind: input, shape index: {}]   ;;  %s2485_s3 = inlined_call_operand.hbm [shape: f32[1,32], index: 3, kind: input, shape index: {}]   ;;  %s2486_s4 = inlined_call_operand.hbm [shape: f32[2,8,32], index: 4, kind: output, shape index: {}]  }
   0x1   :  { %10 = vsyncpa [#allocation6], 0 }
   0x2   :  { %11 = vsyncpa [#allocation9], 0 }
   0x3   :  { %12 = vsyncpa [#allocation4], 0  ;;  %s2220_s15 = smov [#allocation5]   ;;  %s2221_s17 = smov [#allocation2]  }
   0x4   :  { %s30_s16 = sshll.u32 %s2220_s15, 4  ;;  %s18_s18 = sshll.u32 %s2221_s17, 4  ;;  %s31_s16 = int_to_ptr.vmem [resolvable:$true] %s30_s16  ;;  %s2265_s18 = int_to_ptr.vmem [resolvable:$true] %s18_s18 }
   0x5   :  { %s2102_s21 = scalar_lea.hbm %s2483_s1, 512 }
   0x6   :  { %p2103_p0 = scmp.ne.s32.totalorder %s2483_s1, %s2102_s21  ;;  %p2106_p1 = scmp.lt.u32.totalorder %s2102_s21, %s2483_s1 }
   0x8   :  { %p2108_p2 = pnand %p2106_p1, %p2103_p0 }
   0xa   :  { %2111 = shalt.err (!%p2108_p2)
}
   0xb   :  { %s2112_s26 = scalar_lea.vmem %s31_s16, 512  ;;  %p2117_p4 = scmp.lt.s32.totalorder %s31_s16, %s31_s16 }
   0xc   :  { %p2113_p3 = scmp.ne.s32.totalorder %s31_s16, %s2112_s26  ;;  %p2118_p5 = scmp.lt.s32.totalorder %s2112_s26, %s2112_s26 }
   0xe   :  { %p2119_p6 = por %p2118_p5, %p2117_p4 }
  0x10   :  { %p2120_p7 = pnand %p2119_p6, %p2113_p3 }
  0x12   :  { %2123 = shalt.err (!%p2120_p7)
}
  0x13   :  { %s2222_s27 = smov 128   ;;  %s2223_s28 = smov 8  }
  0x14   :  { %36 = dma.hbm_to_vmem [thread:$0]  %s2483_s1, 512, %s31_s16, [#allocation6], %s2222_s27, %s2222_s27, %s2223_s28  }
  0x15   :  { %s2124_s7 = scalar_lea.hbm %s2482_s0, 256 }
  0x16   :  { %p2125_p8 = scmp.ne.s32.totalorder %s2482_s0, %s2124_s7  ;;  %p2128_p9 = scmp.lt.u32.totalorder %s2124_s7, %s2482_s0 }
  0x18   :  { %p2130_p10 = pnand %p2128_p9, %p2125_p8 }
  0x1a   :  { %2133 = shalt.err (!%p2130_p10)
}
  0x1b   :  { %s2134_s12 = scalar_lea.vmem %s2265_s18, 256  ;;  %p2139_p12 = scmp.lt.s32.totalorder %s2265_s18, %s2265_s18 }
  0x1c   :  { %p2135_p11 = scmp.ne.s32.totalorder %s2265_s18, %s2134_s12  ;;  %p2140_p13 = scmp.lt.s32.totalorder %s2134_s12, %s2134_s12 }
  0x1e   :  { %p2141_p0 = por %p2140_p13, %p2139_p12 }
  0x20   :  { %p2142_p1 = pnand %p2141_p0, %p2135_p11 }
  0x22   :  { %2145 = shalt.err (!%p2142_p1)
}
  0x23   :  { %24 = dma.hbm_to_vmem [thread:$0]  %s2482_s0, 256, %s2265_s18, [#allocation3], %s2222_s27, %s2222_s27, %s2223_s28  }
  0x24   :  { %s2224_s14 = smov [#allocation7]   ;;  %s2225_s16 = smov [#allocation8]  }
  0x25   :  { %s42_s15 = sshll.u32 %s2224_s14, 4  ;;  %s55_s17 = sshll.u32 %s2225_s16, 4  ;;  %s43_s15 = int_to_ptr.vmem [resolvable:$true] %s42_s15  ;;  %s56_s17 = int_to_ptr.vmem [resolvable:$true] %s55_s17 }
  0x26   :  { %s2146_s21 = scalar_lea.hbm %s2484_s2, 512 }
  0x27   :  { %p2147_p2 = scmp.ne.s32.totalorder %s2484_s2, %s2146_s21  ;;  %p2150_p3 = scmp.lt.u32.totalorder %s2146_s21, %s2484_s2 }
  0x29   :  { %p2152_p4 = pnand %p2150_p3, %p2147_p2 }
  0x2b   :  { %2155 = shalt.err (!%p2152_p4)
}
  0x2c   :  { %s2156_s0 = scalar_lea.vmem %s43_s15, 512  ;;  %p2161_p6 = scmp.lt.s32.totalorder %s43_s15, %s43_s15 }
  0x2d   :  { %p2157_p5 = scmp.ne.s32.totalorder %s43_s15, %s2156_s0  ;;  %p2162_p7 = scmp.lt.s32.totalorder %s2156_s0, %s2156_s0 }
  0x2f   :  { %p2163_p8 = por %p2162_p7, %p2161_p6 }
  0x31   :  { %p2164_p9 = pnand %p2163_p8, %p2157_p5 }
  0x33   :  { %2167 = shalt.err (!%p2164_p9)
}
  0x34   :  { %48 = dma.hbm_to_vmem [thread:$0]  %s2484_s2, 512, %s43_s15, [#allocation6], %s2222_s27, %s2222_s27, %s2223_s28  }
  0x35   :  { %s2168_s5 = scalar_lea.hbm %s2485_s3, 16 }
  0x36   :  { %p2169_p10 = scmp.ne.s32.totalorder %s2485_s3, %s2168_s5  ;;  %p2172_p11 = scmp.lt.u32.totalorder %s2168_s5, %s2485_s3 }
  0x38   :  { %p2174_p12 = pnand %p2172_p11, %p2169_p10 }
  0x3a   :  { %2177 = shalt.err (!%p2174_p12)
}
  0x3b   :  { %s2178_s10 = scalar_lea.vmem %s56_s17, 16  ;;  %s2182_s11 = scalar_lea.vmem %s56_s17, 32 }
  0x3c   :  { %p2179_p13 = scmp.ne.s32.totalorder %s56_s17, %s2178_s10  ;;  %p2183_p0 = scmp.lt.s32.totalorder %s56_s17, %s56_s17 }
  0x3d   :  { %p2184_p1 = scmp.lt.s32.totalorder %s2182_s11, %s2178_s10 }
  0x3f   :  { %p2185_p2 = por %p2184_p1, %p2183_p0 }
  0x41   :  { %p2186_p3 = pnand %p2185_p2, %p2179_p13 }
  0x43   :  { %2189 = shalt.err (!%p2186_p3)
}
  0x44   :  { %58 = dma.hbm_to_vmem [thread:$0]  %s2485_s3, 16, %s56_s17, [#allocation9]  }
  0x45   :  { %2212 = dma.done.wait [#allocation3], 256  }
  0x46   :  { %2213 = vsyncadd [#allocation3], 4294967040 }
  0x47   :  { %2214 = dma.done.wait [#allocation6], 1024  }
  0x48   :  { %2215 = vsyncadd [#allocation6], 4294966272 }
  0x49   :  { %2216 = dma.done.wait [#allocation9], 16  }
  0x4a   :  { %2217 = vsyncadd [#allocation9], 4294967280  ;;  %vm77_vm0 = vcmask 261120   ;;  %v73_v0 = vld [vmem:[#allocation5] sm:$0xff]  ;;  %v74_v1 = vld [vmem:[#allocation5 + $0x8] sm:$0xff]  ;;  %v2226_v8 = vmov 0.0  }
  0x4b   :  { %v75_v2 = vld [vmem:[#allocation5 + $0x10] sm:$0xff]  ;;  %v2036_v3 = vpack.c.bf16 %v74_v1, %v73_v0  ;;  %v76_v4 = vld [vmem:[#allocation5 + $0x18] sm:$0xff]  ;;  %1936 = vmatprep.subr.mxu1 %v2226_v8  ;;  %vm2227_vm1 = vmmov 0   ;;  %s2228_s3 = smov 96   ;;  %vm162_vm2 = vcmask 64512   ;;  %s2229_s1 = smov 64  }
  0x4c   :  { %v71_v5 = vld [vmem:[#allocation2] sm:$0xff]  ;;  %v2040_v6 = vpack.c.bf16 %v76_v4, %v75_v2  ;;  %v72_v7 = vld [vmem:[#allocation2 + $0x8] sm:$0xff]  ;;  %1938 = vmatprep.mubr.msk.f32.mxu1 %vm2227_vm1, %v2226_v8  ;;  %s2230_s13 = smov 88   ;;  %s2231_s14 = smov 120  }
  0x4d   :  { %1933 = vmatprep.mubr.msk.f32.mxu0 %vm77_vm0, %v71_v5  ;;  %2037 = vmatprep.subr.bf16.mxu0 %v2036_v3  ;;  %s2232_s15 = smov 56   ;;  %s2233_s16 = smov 112  }
  0x4e   :  { %2039 = vmatpush3.bf16.msra.mxu0 %v2036_v3  ;;  %s2234_s17 = smov 80   ;;  %s2235_s19 = smov 48  }
  0x4f   :  { %2041 = vmatprep.subr.bf16.mxu0 %v2040_v6  ;;  %s2236_s20 = smov 72   ;;  %s2237_s21 = smov 104  }
  0x50   :  { %s2238_s22 = smov 40   ;;  %s2239_s23 = smov [#allocation10]  }
  0x51   :  { %s1826_s24 = sshll.u32 %s2239_s23, 4  ;;  %s1827_s24 = int_to_ptr.vmem [resolvable:$true] %s1826_s24 }
  0x52   :  { %2043 = vmatpush3.bf16.msra.mxu0 %v2040_v6  ;;  %s2190_s25 = scalar_lea.vmem %s1827_s24, 256  ;;  %p2195_p5 = scmp.lt.s32.totalorder %s1827_s24, %s1827_s24 }
  0x53   :  { %1956 = vmatprep.subr.mxu0 %v2226_v8  ;;  %p2191_p4 = scmp.ne.s32.totalorder %s1827_s24, %s2190_s25  ;;  %p2196_p6 = scmp.lt.s32.totalorder %s2190_s25, %s2190_s25 }
  0x55   :  { %1934 = vmatmul.mubr.msk.f32.vlgmr.msra.gmra.mrb[0].mxu0 %vm77_vm0, %v72_v7  ;;  %p2197_p7 = por %p2196_p6, %p2195_p5 }
  0x56   :  { %1958 = vmatprep.mubr.msk.f32.mxu0 %vm2227_vm1, %v2226_v8 }
  0x57   :  { %p2198_p8 = pnand %p2197_p7, %p2191_p4 }
 0x128   :  { %v2337_v9 = vpop.f32.mrb[0].mxu0 }
 0x129   :  { %v2339_v10 = vpop.f32.mrb[1].mxu0 }
 0x12a   :  { %160 = vrot.lane.b32.xlu0 %v2339_v10, %s2228_s3 }
 0x12e   :  { %238 = vrot.lane.b32.xlu0 %v2337_v9, %s2228_s3 }
 0x19c   :  { %v161_v11 = vpop.permute.xlu0 %160 }
 0x19d   :  { %1937 = vmatpush3.xpose.msk.msra.mxu1 %vm162_vm2, %v161_v11 }
 0x19e   :  { %1941 = vmatprep.subr.mxu1 %v2226_v8 }
 0x1a0   :  { %1939 = vmatmul.mubr.msk.f32.vlgmr.msra.gmra.mrb[0].mxu1 %vm162_vm2, %v2339_v10  ;;  %v239_v12 = vpop.permute.xlu0 %238 }
 0x1a1   :  { %1942 = vmatpush3.xpose.msk.msra.mxu1 %vm162_vm2, %v239_v12  ;;  %1943 = vmatprep.mubr.msk.f32.mxu1 %vm2227_vm1, %v2226_v8 }
 0x1a2   :  { %1946 = vmatprep.subr.mxu1 %v2226_v8 }
 0x1a4   :  { %1944 = vmatmul.mubr.msk.f32.vlgmr.msra.gmra.mrb[2].mxu1 %vm162_vm2, %v2337_v9 }
 0x1a5   :  { %1948 = vmatprep.mubr.msk.f32.mxu1 %vm2227_vm1, %v2226_v8 }
 0x273   :  { %v233_v13 = vpop.f32.mrb[0].mxu1 }
 0x274   :  { %v1940_v14 = vpop.f32.mrb[1].mxu1  ;;  %v314_v15 = vsel %vm162_vm2, %v233_v13, -inf }
 0x275   :  { %315 = vmax.xlane.f32.xlu1 %v314_v15  ;;  %v488_v14 = vld [vmem:[#allocation7] sm:$0xff] }
 0x277   :  { %v310_v16 = vpop.f32.mrb[2].mxu1 }
 0x278   :  { %v1945_v17 = vpop.f32.mrb[3].mxu1  ;;  %v317_v18 = vsel %vm162_vm2, %v310_v16, -inf }
 0x279   :  { %318 = vmax.xlane.f32.xlu1 %v317_v18 }
 0x28a   :  { %336 = vrot.lane.b32.xlu1 %v2339_v10, %s2229_s1 }
 0x28e   :  { %412 = vrot.lane.b32.xlu1 %v2337_v9, %s2229_s1 }
 0x292   :  { %569 = vrot.lane.b32.xlu1 %v2337_v9, %s2230_s13 }
 0x302   :  { %v316_v19 = vpop.xlane.xlu1 %315 }
 0x303   :  { %v320_v20 = vsub.f32 %v233_v13, %v316_v19  ;;  %v819_v13 = vld [vmem:[#allocation7 + $0x8] sm:$0xff] }
 0x305   :  { %v322_v21 = vmul.f32 1.442695, %v320_v20 }
 0x306   :  { %v319_v22 = vpop.xlane.xlu1 %318 }
 0x307   :  { %2070 = vpow2.f32 %v322_v21  ;;  %v321_v23 = vsub.f32 %v310_v16, %v319_v22 }
 0x309   :  { %v324_v24 = vmul.f32 1.442695, %v321_v23 }
 0x30a   :  { %v337_v25 = vpop.permute.xlu1 %336 }
 0x30b   :  { %2072 = vpow2.f32 %v324_v24  ;;  %1947 = vmatpush3.msra.mxu1 %v337_v25 }
 0x30c   :  { %1951 = vmatprep.subr.mxu1 %v2226_v8 }
 0x30e   :  { %v413_v30 = vpop.permute.xlu1 %412 }
 0x311   :  { %v2071_v26 = vpop.eup %2070 }
 0x312   :  { %v326_v27 = vsel %vm162_vm2, %v2071_v26, 0.0  ;;  %v570_v31 = vpop.permute.xlu1 %569 }
 0x313   :  { %327 = vadd.xlane.f32.xlu0 %v326_v27 }
 0x315   :  { %v2073_v28 = vpop.eup %2072 }
 0x316   :  { %v329_v29 = vsel %vm162_vm2, %v2073_v28, 0.0 }
 0x317   :  { %330 = vadd.xlane.f32.xlu1 %v329_v29 }
 0x328   :  { %567 = vrot.lane.b32.xlu1 %v2337_v9, %s2231_s14 }
 0x329   :  { %491 = vrot.lane.b32.xlu0 %v2339_v10, %s2230_s13 }
 0x32c   :  { %489 = vrot.lane.b32.xlu1 %v2339_v10, %s2231_s14 }
 0x3a0   :  { %v328_v32 = vpop.xlane.xlu0 %327 }
 0x3a1   :  { %2074 = vrcp.f32 %v328_v32 }
 0x3a4   :  { %v331_v33 = vpop.xlane.xlu1 %330  ;;  %v492_v34 = vpop.permute.xlu0 %491 }
 0x3a5   :  { %2076 = vrcp.f32 %v331_v33  ;;  %1957 = vmatpush3.xpose.msk.msra.mxu0 %vm162_vm2, %v492_v34 }
 0x3a6   :  { %1966 = vmatprep.subr.mxu0 %v2226_v8 }
 0x3a8   :  { %v568_v35 = vpop.permute.xlu1 %567 }
 0x3ab   :  { %v2075_v36 = vpop.eup %2074 }
 0x3ac   :  { %v334_v37 = vmul.f32 %v2075_v36, %v2071_v26  ;;  %v490_v38 = vpop.permute.xlu1 %489 }
 0x3ad   :  { %1959 = vmatmul.mubr.msk.f32.vlgmr.msra.gmra.mrb[2].mxu0 %vm162_vm2, %v490_v38 }
 0x3ae   :  { %1949 = vmatmul.mubr.msk.f32.vlgmr.msra.gmra.mrb[4].mxu1 %vm162_vm2, %v334_v37  ;;  %1968 = vmatprep.mubr.msk.f32.mxu0 %vm2227_vm1, %v2226_v8  ;;  %v1312_v37 = vld [vmem:[#allocation7 + $0x10] sm:$0xff] }
 0x3af   :  { %v2077_v39 = vpop.eup %2076  ;;  %1952 = vmatpush3.msra.mxu1 %v413_v30  ;;  %1953 = vmatprep.mubr.msk.f32.mxu1 %vm2227_vm1, %v2226_v8 }
 0x3b0   :  { %v335_v40 = vmul.f32 %v2077_v39, %v2073_v28  ;;  %1961 = vmatprep.subr.mxu1 %v2226_v8 }
 0x3b2   :  { %1954 = vmatmul.mubr.msk.f32.vlgmr.msra.gmra.mrb[6].mxu1 %vm162_vm2, %v335_v40 }
 0x3b3   :  { %1963 = vmatprep.mubr.msk.f32.mxu1 %vm2227_vm1, %v2226_v8 }
 0x3b6   :  { %1962 = vmatpush3.xpose.msk.msra.mxu1 %vm162_vm2, %v570_v31 }
 0x3b7   :  { %1971 = vmatprep.subr.mxu1 %v2226_v8 }
 0x3b9   :  { %1964 = vmatmul.mubr.msk.f32.vlgmr.msra.gmra.mrb[8].mxu1 %vm162_vm2, %v568_v35 }
 0x3ba   :  { %1973 = vmatprep.mubr.msk.f32.mxu1 %vm2227_vm1, %v2226_v8 }
 0x480   :  { %v563_v41 = vpop.f32.mrb[2].mxu0 }
 0x481   :  { %v2383_v42 = vpop.f32.mrb[4].mxu1  ;;  %v1960_v43 = vpop.f32.mrb[3].mxu0  ;;  %v645_v50 = vsel %vm162_vm2, %v563_v41, -inf }
 0x482   :  { %v1950_v44 = vpop.f32.mrb[5].mxu1 }
 0x485   :  { %v2385_v45 = vpop.f32.mrb[6].mxu1 }
 0x486   :  { %v1955_v46 = vpop.f32.mrb[7].mxu1 }
 0x48c   :  { %v641_v47 = vpop.f32.mrb[8].mxu1 }
 0x48d   :  { %v1965_v48 = vpop.f32.mrb[9].mxu1  ;;  %v648_v49 = vsel %vm162_vm2, %v641_v47, -inf }
 0x48e   :  { %649 = vmax.xlane.f32.xlu1 %v648_v49 }
 0x49f   :  { %743 = vrot.lane.b32.xlu1 %v2337_v9, %s2232_s15 }
 0x4a3   :  { %982 = vrot.lane.b32.xlu1 %v2339_v10, %s2233_s16 }
 0x4a7   :  { %1062 = vrot.lane.b32.xlu1 %v2337_v9, %s2234_s17 }
 0x4ab   :  { %1060 = vrot.lane.b32.xlu1 %v2337_v9, %s2233_s16 }
 0x4cf   :  { %646 = vmax.xlane.f32.xlu1 %v645_v50 }
 0x51b   :  { %v650_v51 = vpop.xlane.xlu1 %649 }
 0x51c   :  { %v652_v52 = vsub.f32 %v641_v47, %v650_v51 }
 0x51e   :  { %v655_v53 = vmul.f32 1.442695, %v652_v52 }
 0x51f   :  { %v744_v54 = vpop.permute.xlu1 %743 }
 0x520   :  { %2078 = vpow2.f32 %v655_v53  ;;  %1972 = vmatpush3.msra.mxu1 %v744_v54 }
 0x521   :  { %1986 = vmatprep.subr.mxu1 %v2226_v8 }
 0x523   :  { %v983_v57 = vpop.permute.xlu1 %982 }
 0x527   :  { %v1063_v58 = vpop.permute.xlu1 %1062 }
 0x52a   :  { %v2079_v55 = vpop.eup %2078 }
 0x52b   :  { %v660_v56 = vsel %vm162_vm2, %v2079_v55, 0.0  ;;  %v1061_v59 = vpop.permute.xlu1 %1060 }
 0x52c   :  { %661 = vadd.xlane.f32.xlu0 %v660_v56 }
 0x542   :  { %984 = vrot.lane.b32.xlu0 %v2339_v10, %s2234_s17 }
 0x55c   :  { %v647_v60 = vpop.xlane.xlu1 %646 }
 0x55d   :  { %v651_v61 = vsub.f32 %v563_v41, %v647_v60 }
 0x55f   :  { %v653_v62 = vmul.f32 1.442695, %v651_v61 }
 0x561   :  { %2080 = vpow2.f32 %v653_v62 }
 0x56b   :  { %v2081_v63 = vpop.eup %2080 }
 0x56c   :  { %v657_v0 = vsel %vm162_vm2, %v2081_v63, 0.0 }
 0x56d   :  { %658 = vadd.xlane.f32.xlu0 %v657_v0 }
 0x583   :  { %667 = vrot.lane.b32.xlu0 %v2339_v10, %s2232_s15 }
 0x587   :  { %1236 = vrot.lane.b32.xlu0 %v2337_v9, %s2235_s19 }
 0x58b   :  { %1398 = vrot.lane.b32.xlu0 %v2339_v10, %s2236_s20 }
 0x58f   :  { %1476 = vrot.lane.b32.xlu0 %v2337_v9, %s2236_s20 }
 0x593   :  { %1396 = vrot.lane.b32.xlu0 %v2339_v10, %s2237_s21 }
 0x5b9   :  { %v662_v1 = vpop.xlane.xlu0 %661 }
 0x5ba   :  { %2082 = vrcp.f32 %v662_v1 }
 0x5bd   :  { %v985_v4 = vpop.permute.xlu0 %984 }
 0x5c4   :  { %v2083_v2 = vpop.eup %2082 }
 0x5c5   :  { %v666_v3 = vmul.f32 %v2083_v2, %v2079_v55 }
 0x5c7   :  { %1974 = vmatmul.mubr.msk.f32.vlgmr.msra.gmra.mrb[10].mxu1 %vm162_vm2, %v666_v3 }
 0x5c8   :  { %1987 = vmatpush3.xpose.msk.msra.mxu1 %vm162_vm2, %v985_v4  ;;  %1988 = vmatprep.mubr.msk.f32.mxu1 %vm2227_vm1, %v2226_v8 }
 0x5c9   :  { %1991 = vmatprep.subr.mxu1 %v2226_v8 }
 0x5cb   :  { %1989 = vmatmul.mubr.msk.f32.vlgmr.msra.gmra.mrb[12].mxu1 %vm162_vm2, %v983_v57 }
 0x5cc   :  { %1992 = vmatpush3.xpose.msk.msra.mxu1 %vm162_vm2, %v1063_v58  ;;  %1993 = vmatprep.mubr.msk.f32.mxu1 %vm2227_vm1, %v2226_v8 }
 0x5cd   :  { %2001 = vmatprep.subr.mxu1 %v2226_v8 }
 0x5cf   :  { %1994 = vmatmul.mubr.msk.f32.vlgmr.msra.gmra.mrb[14].mxu1 %vm162_vm2, %v1061_v59 }
 0x5d0   :  { %2003 = vmatprep.mubr.msk.f32.mxu1 %vm2227_vm1, %v2226_v8 }
 0x5fa   :  { %v659_v5 = vpop.xlane.xlu0 %658 }
 0x5fb   :  { %2084 = vrcp.f32 %v659_v5 }
 0x5fe   :  { %v668_v6 = vpop.permute.xlu0 %667 }
 0x5ff   :  { %1967 = vmatpush3.msra.mxu0 %v668_v6 }
 0x600   :  { %1976 = vmatprep.subr.mxu0 %v819_v13 }
 0x602   :  { %v1237_v7 = vpop.permute.xlu0 %1236 }
 0x603   :  { %2002 = vmatpush3.msra.mxu1 %v1237_v7 }
 0x604   :  { %2011 = vmatprep.subr.mxu1 %v2226_v8 }
 0x605   :  { %v2085_v11 = vpop.eup %2084 }
 0x606   :  { %v665_v12 = vmul.f32 %v2085_v11, %v2081_v63  ;;  %v1399_v39 = vpop.permute.xlu0 %1398 }
 0x608   :  { %1969 = vmatmul.mubr.msk.f32.vlgmr.msra.gmra.mrb[4].mxu0 %vm162_vm2, %v665_v12 }
 0x609   :  { %1977 = vmatpush3.msra.mxu0 %v819_v13 }
 0x60a   :  { %1981 = vmatprep.subr.mxu0 %v488_v14  ;;  %v1477_v43 = vpop.permute.xlu0 %1476 }
 0x69a   :  { %v815_v15 = vpop.f32.mrb[10].mxu1 }
 0x69b   :  { %v1975_v16 = vpop.f32.mrb[11].mxu1 }
 0x69e   :  { %v1056_v17 = vpop.f32.mrb[12].mxu1 }
 0x69f   :  { %v1990_v18 = vpop.f32.mrb[13].mxu1  ;;  %v1138_v19 = vsel %vm162_vm2, %v1056_v17, -inf }
 0x6a0   :  { %1139 = vmax.xlane.f32.xlu1 %v1138_v19 }
 0x6a2   :  { %v1134_v20 = vpop.f32.mrb[14].mxu1 }
 0x6a3   :  { %v1995_v21 = vpop.f32.mrb[15].mxu1  ;;  %v1141_v22 = vsel %vm162_vm2, %v1134_v20, -inf }
 0x6a4   :  { %1142 = vmax.xlane.f32.xlu1 %v1141_v22 }
 0x6db   :  { %v739_v23 = vpop.f32.mrb[4].mxu0 }
 0x6dc   :  { %v1970_v24 = vpop.f32.mrb[5].mxu0  ;;  %1978 = vmatprep.mubr.msk.f32.mxu0 %vm162_vm2, %v739_v23 }
 0x6dd   :  { %1979 = vmatmul.mubr.msk.f32.vlgmr.msra.gmra.mrb[6].mxu0 %vm162_vm2, %v815_v15 }
 0x6de   :  { %1983 = vmatprep.mubr.msk.f32.mxu0 %vm162_vm2, %v2383_v42  ;;  %1982 = vmatpush3.msra.mxu0 %v488_v14 }
 0x6df   :  { %1996 = vmatprep.subr.mxu0 %v2226_v8 }
 0x6e5   :  { %1984 = vmatmul.mubr.msk.f32.vlgmr.msra.gmra.mrb[6].mxu0 %vm162_vm2, %v2385_v45  ;;  %v1397_v45 = vpop.permute.xlu0 %1396 }
 0x6e6   :  { %1998 = vmatprep.mubr.msk.f32.mxu0 %vm2227_vm1, %v2226_v8 }
 0x72d   :  { %v1140_v25 = vpop.xlane.xlu1 %1139 }
 0x72e   :  { %v1144_v26 = vsub.f32 %v1056_v17, %v1140_v25 }
 0x730   :  { %v1146_v27 = vmul.f32 1.442695, %v1144_v26 }
 0x731   :  { %v1143_v28 = vpop.xlane.xlu1 %1142 }
 0x732   :  { %2086 = vpow2.f32 %v1146_v27  ;;  %v1145_v29 = vsub.f32 %v1134_v20, %v1143_v28 }
 0x734   :  { %v1148_v30 = vmul.f32 1.442695, %v1145_v29 }
 0x736   :  { %2088 = vpow2.f32 %v1148_v30 }
 0x73c   :  { %v2087_v31 = vpop.eup %2086 }
 0x73d   :  { %v1150_v32 = vsel %vm162_vm2, %v2087_v31, 0.0 }
 0x73e   :  { %1151 = vadd.xlane.f32.xlu1 %v1150_v32 }
 0x740   :  { %v2089_v33 = vpop.eup %2088 }
 0x741   :  { %v1153_v34 = vsel %vm162_vm2, %v2089_v33, 0.0 }
 0x742   :  { %1154 = vadd.xlane.f32.xlu1 %v1153_v34 }
 0x753   :  { %1160 = vrot.lane.b32.xlu1 %v2339_v10, %s2235_s19 }
 0x757   :  { %1474 = vrot.lane.b32.xlu1 %v2337_v9, %s2237_s21 }
 0x7cb   :  { %v1152_v35 = vpop.xlane.xlu1 %1151 }
 0x7cc   :  { %2090 = vrcp.f32 %v1152_v35 }
 0x7cf   :  { %v1155_v36 = vpop.xlane.xlu1 %1154 }
 0x7d0   :  { %2092 = vrcp.f32 %v1155_v36 }
 0x7d3   :  { %v1161_v38 = vpop.permute.xlu1 %1160 }
 0x7d4   :  { %1997 = vmatpush3.msra.mxu0 %v1161_v38 }
 0x7d5   :  { %2006 = vmatprep.subr.mxu0 %v1312_v37 }
 0x7d6   :  { %v2091_v40 = vpop.eup %2090 }
 0x7d7   :  { %v1158_v41 = vmul.f32 %v2091_v40, %v2087_v31  ;;  %v1475_v50 = vpop.permute.xlu1 %1474 }
 0x7d9   :  { %1999 = vmatmul.mubr.msk.f32.vlgmr.msra.gmra.mrb[8].mxu0 %vm162_vm2, %v1158_v41 }
 0x7da   :  { %v2093_v42 = vpop.eup %2092  ;;  %2007 = vmatpush3.msra.mxu0 %v1312_v37 }
 0x7db   :  { %v1159_v44 = vmul.f32 %v2093_v42, %v2089_v33  ;;  %2016 = vmatprep.subr.mxu0 %v2226_v8 }
 0x7dd   :  { %2004 = vmatmul.mubr.msk.f32.vlgmr.msra.gmra.mrb[16].mxu1 %vm162_vm2, %v1159_v44 }
 0x7de   :  { %2012 = vmatpush3.xpose.msk.msra.mxu1 %vm162_vm2, %v1399_v39  ;;  %2013 = vmatprep.mubr.msk.f32.mxu1 %vm2227_vm1, %v2226_v8 }
 0x7df   :  { %2021 = vmatprep.subr.mxu1 %v2226_v8 }
 0x7e1   :  { %2014 = vmatmul.mubr.msk.f32.vlgmr.msra.gmra.mrb[18].mxu1 %vm162_vm2, %v1397_v45 }
 0x7e2   :  { %2023 = vmatprep.mubr.msk.f32.mxu1 %vm2227_vm1, %v2226_v8 }
 0x8ac   :  { %v1232_v46 = vpop.f32.mrb[8].mxu0 }
 0x8ad   :  { %v2000_v47 = vpop.f32.mrb[9].mxu0  ;;  %2008 = vmatprep.mubr.msk.f32.mxu0 %vm162_vm2, %v1232_v46 }
 0x8b0   :  { %v1308_v48 = vpop.f32.mrb[16].mxu1 }
 0x8b1   :  { %v2005_v49 = vpop.f32.mrb[17].mxu1  ;;  %2009 = vmatmul.mubr.msk.f32.vlgmr.msra.gmra.mrb[6].mxu0 %vm162_vm2, %v1308_v48 }
 0x8b2   :  { %2017 = vmatpush3.xpose.msk.msra.mxu0 %vm162_vm2, %v1477_v43  ;;  %2018 = vmatprep.mubr.msk.f32.mxu0 %vm2227_vm1, %v2226_v8 }
 0x8b3   :  { %2026 = vmatprep.subr.mxu0 %v2226_v8 }
 0x8b4   :  { %v1470_v51 = vpop.f32.mrb[18].mxu1 }
 0x8b5   :  { %v2015_v52 = vpop.f32.mrb[19].mxu1  ;;  %2019 = vmatmul.mubr.msk.f32.vlgmr.msra.gmra.mrb[10].mxu0 %vm162_vm2, %v1475_v50  ;;  %v1552_v53 = vsel %vm162_vm2, %v1470_v51, -inf }
 0x8b6   :  { %1553 = vmax.xlane.f32.xlu0 %v1552_v53  ;;  %2028 = vmatprep.mubr.msk.f32.mxu0 %vm2227_vm1, %v2226_v8 }
 0x943   :  { %v1554_v54 = vpop.xlane.xlu0 %1553 }
 0x944   :  { %v1558_v55 = vsub.f32 %v1470_v51, %v1554_v54 }
 0x946   :  { %v1560_v56 = vmul.f32 1.442695, %v1558_v55 }
 0x948   :  { %2094 = vpow2.f32 %v1560_v56 }
 0x952   :  { %v2095_v57 = vpop.eup %2094 }
 0x953   :  { %v1564_v58 = vsel %vm162_vm2, %v2095_v57, 0.0 }
 0x954   :  { %1565 = vadd.xlane.f32.xlu0 %v1564_v58 }
 0x988   :  { %v1548_v59 = vpop.f32.mrb[10].mxu0 }
 0x989   :  { %v2020_v60 = vpop.f32.mrb[11].mxu0  ;;  %v1555_v61 = vsel %vm162_vm2, %v1548_v59, -inf }
 0x98a   :  { %1556 = vmax.xlane.f32.xlu1 %v1555_v61 }
 0x99b   :  { %1574 = vrot.lane.b32.xlu1 %v2339_v10, %s2238_s22  ;;  %v1726_v10 = vld [vmem:[#allocation7 + $0x18] sm:$0xff] }
 0x9e1   :  { %v1566_v62 = vpop.xlane.xlu0 %1565 }
 0x9e2   :  { %2096 = vrcp.f32 %v1566_v62 }
 0x9ec   :  { %v2097_v8 = vpop.eup %2096 }
 0x9ed   :  { %v1572_v2 = vmul.f32 %v2097_v8, %v2095_v57 }
 0xa17   :  { %v1557_v63 = vpop.xlane.xlu1 %1556 }
 0xa18   :  { %v1559_v0 = vsub.f32 %v1548_v59, %v1557_v63 }
 0xa1a   :  { %v1562_v1 = vmul.f32 1.442695, %v1559_v0 }
 0xa1b   :  { %v1575_v3 = vpop.permute.xlu1 %1574 }
 0xa1c   :  { %2098 = vpow2.f32 %v1562_v1  ;;  %2022 = vmatpush3.msra.mxu1 %v1575_v3 }
 0xa1d   :  { %2024 = vmatmul.mubr.msk.f32.vlgmr.msra.gmra.mrb[20].mxu1 %vm162_vm2, %v1572_v2 }
 0xa26   :  { %v2099_v4 = vpop.eup %2098 }
 0xa27   :  { %v1567_v5 = vsel %vm162_vm2, %v2099_v4, 0.0 }
 0xa28   :  { %1568 = vadd.xlane.f32.xlu0 %v1567_v5 }
 0xa3e   :  { %1650 = vrot.lane.b32.xlu0 %v2337_v9, %s2238_s22  ;;  %v1874_v9 = vld [vmem:[#allocation8] ss:$0 sm:$0xff] }
 0xab5   :  { %v1569_v6 = vpop.xlane.xlu0 %1568 }
 0xab6   :  { %2100 = vrcp.f32 %v1569_v6 }
 0xab9   :  { %v1651_v7 = vpop.permute.xlu0 %1650 }
 0xaba   :  { %2027 = vmatpush3.msra.mxu0 %v1651_v7 }
 0xabb   :  { %2031 = vmatprep.subr.mxu0 %v1726_v10 }
 0xac0   :  { %v2101_v11 = vpop.eup %2100 }
 0xac1   :  { %v1573_v12 = vmul.f32 %v2101_v11, %v2099_v4 }
 0xac3   :  { %2029 = vmatmul.mubr.msk.f32.vlgmr.msra.gmra.mrb[12].mxu0 %vm162_vm2, %v1573_v12 }
 0xac4   :  { %2032 = vmatpush3.msra.mxu0 %v1726_v10 }
 0xaf0   :  { %v1646_v13 = vpop.f32.mrb[20].mxu1 }
 0xaf1   :  { %v2025_v14 = vpop.f32.mrb[21].mxu1  ;;  %2033 = vmatprep.mubr.msk.f32.mxu0 %vm162_vm2, %v1646_v13 }
 0xb96   :  { %v1722_v15 = vpop.f32.mrb[12].mxu0 }
 0xb97   :  { %v2030_v16 = vpop.f32.mrb[13].mxu0  ;;  %2034 = vmatmul.mubr.msk.f32.vlgmr.msra.gmra.mrb[6].mxu0 %vm162_vm2, %v1722_v15 }
 0xc6a   :  { %v2035_v17 = vpop.f32.mrb[6].mxu0 }
 0xc6b   :  { %v1818_v18 = vadd.f32 %v2035_v17, %v1874_v9  ;;  %v1799_v19 = vpop.f32.mrb[7].mxu0 }
 0xc6c   :  { %v1817_v20 = vadd.f32 %v1874_v9, %v1799_v19 }
 0xc6d   :  { %1820 = vst.msk [vmem:[#allocation10 + $0x8] sm:$0xff] %vm77_vm0, %v1818_v18 }
 0xc6e   :  { %1819 = vst.msk [vmem:[#allocation10] sm:$0xff] %vm77_vm0, %v1817_v20 }
 0xc6f   :  { %2201 = shalt.err (!%p2198_p8)
}
 0xc70   :  { %s2202_s26 = scalar_lea.hbm %s2486_s4, 256 }
 0xc71   :  { %p2203_p9 = scmp.ne.s32.totalorder %s2486_s4, %s2202_s26  ;;  %p2206_p10 = scmp.lt.u32.totalorder %s2202_s26, %s2486_s4 }
 0xc73   :  { %p2208_p11 = pnand %p2206_p10, %p2203_p9 }
 0xc75   :  { %2211 = shalt.err (!%p2208_p11)
}
 0xc76   :  { %1832 = dma.vmem_to_hbm [thread:$0]  %s1827_s24, 256, %s2486_s4, [#allocation4], %s2222_s27, %s2222_s27, %s2223_s28  }
 0xc77   :  { %2218 = dma.done.wait [#allocation4], 256  }
 0xc78   :  { %2219 = vsyncadd [#allocation4], 4294967040 }
 0xc79   :  { %1836 = vsyncpa [#allocation3], 1 }
 0xc7a   :  { %1837 = vsyncpa [#allocation6], 1 }
 0xc7b   :  { %1838 = vsyncpa [#allocation9], 1 }
 0xc7c   :  { %1839 = vsyncpa [#allocation4], 1 }

// kernel: tpu_custom_call.1
= control target key start
LH: loop header
LB: loop body
LE: loop exit
PB: predicated region body
PF: predicated region fallthrough
CT: control target
= control target key end

     0   :  { %9 = vsyncpa [#allocation3], 0  ;;  %s2482_s0 = inlined_call_operand.hbm [shape: f32[2,8,32], index: 0, kind: input, shape index: {}]   ;;  %s2483_s1 = inlined_call_operand.hbm [shape: f32[32,96], index: 1, kind: input, shape index: {}]   ;;  %s2484_s2 = inlined_call_operand.hbm [shape: f32[32,32], index: 2, kind: input, shape index: {}]   ;;  %s2485_s3 = inlined_call_operand.hbm [shape: f32[1,32], index: 3, kind: input, shape index: {}]   ;;  %s2486_s4 = inlined_call_operand.hbm [shape: f32[2,8,32], index: 4, kind: output, shape index: {}]  }
   0x1   :  { %10 = vsyncpa [#allocation6], 0 }
   0x2   :  { %11 = vsyncpa [#allocation9], 0 }
   0x3   :  { %12 = vsyncpa [#allocation4], 0  ;;  %s2220_s15 = smov [#allocation5]   ;;  %s2221_s17 = smov [#allocation2]  }
   0x4   :  { %s30_s16 = sshll.u32 %s2220_s15, 4  ;;  %s18_s18 = sshll.u32 %s2221_s17, 4  ;;  %s31_s16 = int_to_ptr.vmem [resolvable:$true] %s30_s16  ;;  %s2265_s18 = int_to_ptr.vmem [resolvable:$true] %s18_s18 }
   0x5   :  { %s2102_s21 = scalar_lea.hbm %s2483_s1, 512 }
   0x6   :  { %p2103_p0 = scmp.ne.s32.totalorder %s2483_s1, %s2102_s21  ;;  %p2106_p1 = scmp.lt.u32.totalorder %s2102_s21, %s2483_s1 }
   0x8   :  { %p2108_p2 = pnand %p2106_p1, %p2103_p0 }
   0xa   :  { %2111 = shalt.err (!%p2108_p2)
}
   0xb   :  { %s2112_s26 = scalar_lea.vmem %s31_s16, 512  ;;  %p2117_p4 = scmp.lt.s32.totalorder %s31_s16, %s31_s16 }
   0xc   :  { %p2113_p3 = scmp.ne.s32.totalorder %s31_s16, %s2112_s26  ;;  %p2118_p5 = scmp.lt.s32.totalorder %s2112_s26, %s2112_s26 }
   0xe   :  { %p2119_p6 = por %p2118_p5, %p2117_p4 }
  0x10   :  { %p2120_p7 = pnand %p2119_p6, %p2113_p3 }
  0x12   :  { %2123 = shalt.err (!%p2120_p7)
}
  0x13   :  { %s2222_s27 = smov 128   ;;  %s2223_s28 = smov 8  }
  0x14   :  { %36 = dma.hbm_to_vmem [thread:$0]  %s2483_s1, 512, %s31_s16, [#allocation6], %s2222_s27, %s2222_s27, %s2223_s28  }
  0x15   :  { %s2124_s7 = scalar_lea.hbm %s2482_s0, 256 }
  0x16   :  { %p2125_p8 = scmp.ne.s32.totalorder %s2482_s0, %s2124_s7  ;;  %p2128_p9 = scmp.lt.u32.totalorder %s2124_s7, %s2482_s0 }
  0x18   :  { %p2130_p10 = pnand %p2128_p9, %p2125_p8 }
  0x1a   :  { %2133 = shalt.err (!%p2130_p10)
}
  0x1b   :  { %s2134_s12 = scalar_lea.vmem %s2265_s18, 256  ;;  %p2139_p12 = scmp.lt.s32.totalorder %s2265_s18, %s2265_s18 }
  0x1c   :  { %p2135_p11 = scmp.ne.s32.totalorder %s2265_s18, %s2134_s12  ;;  %p2140_p13 = scmp.lt.s32.totalorder %s2134_s12, %s2134_s12 }
  0x1e   :  { %p2141_p0 = por %p2140_p13, %p2139_p12 }
  0x20   :  { %p2142_p1 = pnand %p2141_p0, %p2135_p11 }
  0x22   :  { %2145 = shalt.err (!%p2142_p1)
}
  0x23   :  { %24 = dma.hbm_to_vmem [thread:$0]  %s2482_s0, 256, %s2265_s18, [#allocation3], %s2222_s27, %s2222_s27, %s2223_s28  }
  0x24   :  { %s2224_s14 = smov [#allocation7]   ;;  %s2225_s16 = smov [#allocation8]  }
  0x25   :  { %s42_s15 = sshll.u32 %s2224_s14, 4  ;;  %s55_s17 = sshll.u32 %s2225_s16, 4  ;;  %s43_s15 = int_to_ptr.vmem [resolvable:$true] %s42_s15  ;;  %s56_s17 = int_to_ptr.vmem [resolvable:$true] %s55_s17 }
  0x26   :  { %s2146_s21 = scalar_lea.hbm %s2484_s2, 512 }
  0x27   :  { %p2147_p2 = scmp.ne.s32.totalorder %s2484_s2, %s2146_s21  ;;  %p2150_p3 = scmp.lt.u32.totalorder %s2146_s21, %s2484_s2 }
  0x29   :  { %p2152_p4 = pnand %p2150_p3, %p2147_p2 }
  0x2b   :  { %2155 = shalt.err (!%p2152_p4)
}
  0x2c   :  { %s2156_s0 = scalar_lea.vmem %s43_s15, 512  ;;  %p2161_p6 = scmp.lt.s32.totalorder %s43_s15, %s43_s15 }
  0x2d   :  { %p2157_p5 = scmp.ne.s32.totalorder %s43_s15, %s2156_s0  ;;  %p2162_p7 = scmp.lt.s32.totalorder %s2156_s0, %s2156_s0 }
  0x2f   :  { %p2163_p8 = por %p2162_p7, %p2161_p6 }
  0x31   :  { %p2164_p9 = pnand %p2163_p8, %p2157_p5 }
  0x33   :  { %2167 = shalt.err (!%p2164_p9)
}
  0x34   :  { %48 = dma.hbm_to_vmem [thread:$0]  %s2484_s2, 512, %s43_s15, [#allocation6], %s2222_s27, %s2222_s27, %s2223_s28  }
  0x35   :  { %s2168_s5 = scalar_lea.hbm %s2485_s3, 16 }
  0x36   :  { %p2169_p10 = scmp.ne.s32.totalorder %s2485_s3, %s2168_s5  ;;  %p2172_p11 = scmp.lt.u32.totalorder %s2168_s5, %s2485_s3 }
  0x38   :  { %p2174_p12 = pnand %p2172_p11, %p2169_p10 }
  0x3a   :  { %2177 = shalt.err (!%p2174_p12)
}
  0x3b   :  { %s2178_s10 = scalar_lea.vmem %s56_s17, 16  ;;  %s2182_s11 = scalar_lea.vmem %s56_s17, 32 }
  0x3c   :  { %p2179_p13 = scmp.ne.s32.totalorder %s56_s17, %s2178_s10  ;;  %p2183_p0 = scmp.lt.s32.totalorder %s56_s17, %s56_s17 }
  0x3d   :  { %p2184_p1 = scmp.lt.s32.totalorder %s2182_s11, %s2178_s10 }
  0x3f   :  { %p2185_p2 = por %p2184_p1, %p2183_p0 }
  0x41   :  { %p2186_p3 = pnand %p2185_p2, %p2179_p13 }
  0x43   :  { %2189 = shalt.err (!%p2186_p3)
}
  0x44   :  { %58 = dma.hbm_to_vmem [thread:$0]  %s2485_s3, 16, %s56_s17, [#allocation9]  }
  0x45   :  { %2212 = dma.done.wait [#allocation3], 256  }
  0x46   :  { %2213 = vsyncadd [#allocation3], 4294967040 }
  0x47   :  { %2214 = dma.done.wait [#allocation6], 1024  }
  0x48   :  { %2215 = vsyncadd [#allocation6], 4294966272 }
  0x49   :  { %2216 = dma.done.wait [#allocation9], 16  }
  0x4a   :  { %2217 = vsyncadd [#allocation9], 4294967280  ;;  %vm77_vm0 = vcmask 261120   ;;  %v73_v0 = vld [vmem:[#allocation5] sm:$0xff]  ;;  %v74_v1 = vld [vmem:[#allocation5 + $0x8] sm:$0xff]  ;;  %v2226_v8 = vmov 0.0  }
  0x4b   :  { %v75_v2 = vld [vmem:[#allocation5 + $0x10] sm:$0xff]  ;;  %v2036_v3 = vpack.c.bf16 %v74_v1, %v73_v0  ;;  %v76_v4 = vld [vmem:[#allocation5 + $0x18] sm:$0xff]  ;;  %1936 = vmatprep.subr.mxu1 %v2226_v8  ;;  %vm2227_vm1 = vmmov 0   ;;  %s2228_s3 = smov 96   ;;  %vm162_vm2 = vcmask 64512   ;;  %s2229_s1 = smov 64  }
  0x4c   :  { %v71_v5 = vld [vmem:[#allocation2] sm:$0xff]  ;;  %v2040_v6 = vpack.c.bf16 %v76_v4, %v75_v2  ;;  %v72_v7 = vld [vmem:[#allocation2 + $0x8] sm:$0xff]  ;;  %1938 = vmatprep.mubr.msk.f32.mxu1 %vm2227_vm1, %v2226_v8  ;;  %s2230_s13 = smov 88   ;;  %s2231_s14 = smov 120  }
  0x4d   :  { %1933 = vmatprep.mubr.msk.f32.mxu0 %vm77_vm0, %v71_v5  ;;  %2037 = vmatprep.subr.bf16.mxu0 %v2036_v3  ;;  %s2232_s15 = smov 56   ;;  %s2233_s16 = smov 112  }
  0x4e   :  { %2039 = vmatpush3.bf16.msra.mxu0 %v2036_v3  ;;  %s2234_s17 = smov 80   ;;  %s2235_s19 = smov 48  }
  0x4f   :  { %2041 = vmatprep.subr.bf16.mxu0 %v2040_v6  ;;  %s2236_s20 = smov 72   ;;  %s2237_s21 = smov 104  }
  0x50   :  { %s2238_s22 = smov 40   ;;  %s2239_s23 = smov [#allocation10]  }
  0x51   :  { %s1826_s24 = sshll.u32 %s2239_s23, 4  ;;  %s1827_s24 = int_to_ptr.vmem [resolvable:$true] %s1826_s24 }
  0x52   :  { %2043 = vmatpush3.bf16.msra.mxu0 %v2040_v6  ;;  %s2190_s25 = scalar_lea.vmem %s1827_s24, 256  ;;  %p2195_p5 = scmp.lt.s32.totalorder %s1827_s24, %s1827_s24 }
  0x53   :  { %1956 = vmatprep.subr.mxu0 %v2226_v8  ;;  %p2191_p4 = scmp.ne.s32.totalorder %s1827_s24, %s2190_s25  ;;  %p2196_p6 = scmp.lt.s32.totalorder %s2190_s25, %s2190_s25 }
  0x55   :  { %1934 = vmatmul.mubr.msk.f32.vlgmr.msra.gmra.mrb[0].mxu0 %vm77_vm0, %v72_v7  ;;  %p2197_p7 = por %p2196_p6, %p2195_p5 }
  0x56   :  { %1958 = vmatprep.mubr.msk.f32.mxu0 %vm2227_vm1, %v2226_v8 }
  0x57   :  { %p2198_p8 = pnand %p2197_p7, %p2191_p4 }
 0x128   :  { %v2337_v9 = vpop.f32.mrb[0].mxu0 }
 0x129   :  { %v2339_v10 = vpop.f32.mrb[1].mxu0 }
 0x12a   :  { %160 = vrot.lane.b32.xlu0 %v2339_v10, %s2228_s3 }
 0x12e   :  { %238 = vrot.lane.b32.xlu0 %v2337_v9, %s2228_s3 }
 0x19c   :  { %v161_v11 = vpop.permute.xlu0 %160 }
 0x19d   :  { %1937 = vmatpush3.xpose.msk.msra.mxu1 %vm162_vm2, %v161_v11 }
 0x19e   :  { %1941 = vmatprep.subr.mxu1 %v2226_v8 }
 0x1a0   :  { %1939 = vmatmul.mubr.msk.f32.vlgmr.msra.gmra.mrb[0].mxu1 %vm162_vm2, %v2339_v10  ;;  %v239_v12 = vpop.permute.xlu0 %238 }
 0x1a1   :  { %1942 = vmatpush3.xpose.msk.msra.mxu1 %vm162_vm2, %v239_v12  ;;  %1943 = vmatprep.mubr.msk.f32.mxu1 %vm2227_vm1, %v2226_v8 }
 0x1a2   :  { %1946 = vmatprep.subr.mxu1 %v2226_v8 }
 0x1a4   :  { %1944 = vmatmul.mubr.msk.f32.vlgmr.msra.gmra.mrb[2].mxu1 %vm162_vm2, %v2337_v9 }
 0x1a5   :  { %1948 = vmatprep.mubr.msk.f32.mxu1 %vm2227_vm1, %v2226_v8 }
 0x273   :  { %v233_v13 = vpop.f32.mrb[0].mxu1 }
 0x274   :  { %v1940_v14 = vpop.f32.mrb[1].mxu1  ;;  %v314_v15 = vsel %vm162_vm2, %v233_v13, -inf }
 0x275   :  { %315 = vmax.xlane.f32.xlu1 %v314_v15  ;;  %v488_v14 = vld [vmem:[#allocation7] sm:$0xff] }
 0x277   :  { %v310_v16 = vpop.f32.mrb[2].mxu1 }
 0x278   :  { %v1945_v17 = vpop.f32.mrb[3].mxu1  ;;  %v317_v18 = vsel %vm162_vm2, %v310_v16, -inf }
 0x279   :  { %318 = vmax.xlane.f32.xlu1 %v317_v18 }
 0x28a   :  { %336 = vrot.lane.b32.xlu1 %v2339_v10, %s2229_s1 }
 0x28e   :  { %412 = vrot.lane.b32.xlu1 %v2337_v9, %s2229_s1 }
 0x292   :  { %569 = vrot.lane.b32.xlu1 %v2337_v9, %s2230_s13 }
 0x302   :  { %v316_v19 = vpop.xlane.xlu1 %315 }
 0x303   :  { %v320_v20 = vsub.f32 %v233_v13, %v316_v19  ;;  %v819_v13 = vld [vmem:[#allocation7 + $0x8] sm:$0xff] }
 0x305   :  { %v322_v21 = vmul.f32 1.442695, %v320_v20 }
 0x306   :  { %v319_v22 = vpop.xlane.xlu1 %318 }
 0x307   :  { %2070 = vpow2.f32 %v322_v21  ;;  %v321_v23 = vsub.f32 %v310_v16, %v319_v22 }
 0x309   :  { %v324_v24 = vmul.f32 1.442695, %v321_v23 }
 0x30a   :  { %v337_v25 = vpop.permute.xlu1 %336 }
 0x30b   :  { %2072 = vpow2.f32 %v324_v24  ;;  %1947 = vmatpush3.msra.mxu1 %v337_v25 }
 0x30c   :  { %1951 = vmatprep.subr.mxu1 %v2226_v8 }
 0x30e   :  { %v413_v30 = vpop.permute.xlu1 %412 }
 0x311   :  { %v2071_v26 = vpop.eup %2070 }
 0x312   :  { %v326_v27 = vsel %vm162_vm2, %v2071_v26, 0.0  ;;  %v570_v31 = vpop.permute.xlu1 %569 }
 0x313   :  { %327 = vadd.xlane.f32.xlu0 %v326_v27 }
 0x315   :  { %v2073_v28 = vpop.eup %2072 }
 0x316   :  { %v329_v29 = vsel %vm162_vm2, %v2073_v28, 0.0 }
 0x317   :  { %330 = vadd.xlane.f32.xlu1 %v329_v29 }
 0x328   :  { %567 = vrot.lane.b32.xlu1 %v2337_v9, %s2231_s14 }
 0x329   :  { %491 = vrot.lane.b32.xlu0 %v2339_v10, %s2230_s13 }
 0x32c   :  { %489 = vrot.lane.b32.xlu1 %v2339_v10, %s2231_s14 }
 0x3a0   :  { %v328_v32 = vpop.xlane.xlu0 %327 }
 0x3a1   :  { %2074 = vrcp.f32 %v328_v32 }
 0x3a4   :  { %v331_v33 = vpop.xlane.xlu1 %330  ;;  %v492_v34 = vpop.permute.xlu0 %491 }
 0x3a5   :  { %2076 = vrcp.f32 %v331_v33  ;;  %1957 = vmatpush3.xpose.msk.msra.mxu0 %vm162_vm2, %v492_v34 }
 0x3a6   :  { %1966 = vmatprep.subr.mxu0 %v2226_v8 }
 0x3a8   :  { %v568_v35 = vpop.permute.xlu1 %567 }
 0x3ab   :  { %v2075_v36 = vpop.eup %2074 }
 0x3ac   :  { %v334_v37 = vmul.f32 %v2075_v36, %v2071_v26  ;;  %v490_v38 = vpop.permute.xlu1 %489 }
 0x3ad   :  { %1959 = vmatmul.mubr.msk.f32.vlgmr.msra.gmra.mrb[2].mxu0 %vm162_vm2, %v490_v38 }
 0x3ae   :  { %1949 = vmatmul.mubr.msk.f32.vlgmr.msra.gmra.mrb[4].mxu1 %vm162_vm2, %v334_v37  ;;  %1968 = vmatprep.mubr.msk.f32.mxu0 %vm2227_vm1, %v2226_v8  ;;  %v1312_v37 = vld [vmem:[#allocation7 + $0x10] sm:$0xff] }
 0x3af   :  { %v2077_v39 = vpop.eup %2076  ;;  %1952 = vmatpush3.msra.mxu1 %v413_v30  ;;  %1953 = vmatprep.mubr.msk.f32.mxu1 %vm2227_vm1, %v2226_v8 }
 0x3b0   :  { %v335_v40 = vmul.f32 %v2077_v39, %v2073_v28  ;;  %1961 = vmatprep.subr.mxu1 %v2226_v8 }
 0x3b2   :  { %1954 = vmatmul.mubr.msk.f32.vlgmr.msra.gmra.mrb[6].mxu1 %vm162_vm2, %v335_v40 }
 0x3b3   :  { %1963 = vmatprep.mubr.msk.f32.mxu1 %vm2227_vm1, %v2226_v8 }
 0x3b6   :  { %1962 = vmatpush3.xpose.msk.msra.mxu1 %vm162_vm2, %v570_v31 }
 0x3b7   :  { %1971 = vmatprep.subr.mxu1 %v2226_v8 }
 0x3b9   :  { %1964 = vmatmul.mubr.msk.f32.vlgmr.msra.gmra.mrb[8].mxu1 %vm162_vm2, %v568_v35 }
 0x3ba   :  { %1973 = vmatprep.mubr.msk.f32.mxu1 %vm2227_vm1, %v2226_v8 }
 0x480   :  { %v563_v41 = vpop.f32.mrb[2].mxu0 }
 0x481   :  { %v2383_v42 = vpop.f32.mrb[4].mxu1  ;;  %v1960_v43 = vpop.f32.mrb[3].mxu0  ;;  %v645_v50 = vsel %vm162_vm2, %v563_v41, -inf }
 0x482   :  { %v1950_v44 = vpop.f32.mrb[5].mxu1 }
 0x485   :  { %v2385_v45 = vpop.f32.mrb[6].mxu1 }
 0x486   :  { %v1955_v46 = vpop.f32.mrb[7].mxu1 }
 0x48c   :  { %v641_v47 = vpop.f32.mrb[8].mxu1 }
 0x48d   :  { %v1965_v48 = vpop.f32.mrb[9].mxu1  ;;  %v648_v49 = vsel %vm162_vm2, %v641_v47, -inf }
 0x48e   :  { %649 = vmax.xlane.f32.xlu1 %v648_v49 }
 0x49f   :  { %743 = vrot.lane.b32.xlu1 %v2337_v9, %s2232_s15 }
 0x4a3   :  { %982 = vrot.lane.b32.xlu1 %v2339_v10, %s2233_s16 }
 0x4a7   :  { %1062 = vrot.lane.b32.xlu1 %v2337_v9, %s2234_s17 }
 0x4ab   :  { %1060 = vrot.lane.b32.xlu1 %v2337_v9, %s2233_s16 }
 0x4cf   :  { %646 = vmax.xlane.f32.xlu1 %v645_v50 }
 0x51b   :  { %v650_v51 = vpop.xlane.xlu1 %649 }
 0x51c   :  { %v652_v52 = vsub.f32 %v641_v47, %v650_v51 }
 0x51e   :  { %v655_v53 = vmul.f32 1.442695, %v652_v52 }
 0x51f   :  { %v744_v54 = vpop.permute.xlu1 %743 }
 0x520   :  { %2078 = vpow2.f32 %v655_v53  ;;  %1972 = vmatpush3.msra.mxu1 %v744_v54 }
 0x521   :  { %1986 = vmatprep.subr.mxu1 %v2226_v8 }
 0x523   :  { %v983_v57 = vpop.permute.xlu1 %982 }
 0x527   :  { %v1063_v58 = vpop.permute.xlu1 %1062 }
 0x52a   :  { %v2079_v55 = vpop.eup %2078 }
 0x52b   :  { %v660_v56 = vsel %vm162_vm2, %v2079_v55, 0.0  ;;  %v1061_v59 = vpop.permute.xlu1 %1060 }
 0x52c   :  { %661 = vadd.xlane.f32.xlu0 %v660_v56 }
 0x542   :  { %984 = vrot.lane.b32.xlu0 %v2339_v10, %s2234_s17 }
 0x55c   :  { %v647_v60 = vpop.xlane.xlu1 %646 }
 0x55d   :  { %v651_v61 = vsub.f32 %v563_v41, %v647_v60 }
 0x55f   :  { %v653_v62 = vmul.f32 1.442695, %v651_v61 }
 0x561   :  { %2080 = vpow2.f32 %v653_v62 }
 0x56b   :  { %v2081_v63 = vpop.eup %2080 }
 0x56c   :  { %v657_v0 = vsel %vm162_vm2, %v2081_v63, 0.0 }
 0x56d   :  { %658 = vadd.xlane.f32.xlu0 %v657_v0 }
 0x583   :  { %667 = vrot.lane.b32.xlu0 %v2339_v10, %s2232_s15 }
 0x587   :  { %1236 = vrot.lane.b32.xlu0 %v2337_v9, %s2235_s19 }
 0x58b   :  { %1398 = vrot.lane.b32.xlu0 %v2339_v10, %s2236_s20 }
 0x58f   :  { %1476 = vrot.lane.b32.xlu0 %v2337_v9, %s2236_s20 }
 0x593   :  { %1396 = vrot.lane.b32.xlu0 %v2339_v10, %s2237_s21 }
 0x5b9   :  { %v662_v1 = vpop.xlane.xlu0 %661 }
 0x5ba   :  { %2082 = vrcp.f32 %v662_v1 }
 0x5bd   :  { %v985_v4 = vpop.permute.xlu0 %984 }
 0x5c4   :  { %v2083_v2 = vpop.eup %2082 }
 0x5c5   :  { %v666_v3 = vmul.f32 %v2083_v2, %v2079_v55 }
 0x5c7   :  { %1974 = vmatmul.mubr.msk.f32.vlgmr.msra.gmra.mrb[10].mxu1 %vm162_vm2, %v666_v3 }
 0x5c8   :  { %1987 = vmatpush3.xpose.msk.msra.mxu1 %vm162_vm2, %v985_v4  ;;  %1988 = vmatprep.mubr.msk.f32.mxu1 %vm2227_vm1, %v2226_v8 }
 0x5c9   :  { %1991 = vmatprep.subr.mxu1 %v2226_v8 }
 0x5cb   :  { %1989 = vmatmul.mubr.msk.f32.vlgmr.msra.gmra.mrb[12].mxu1 %vm162_vm2, %v983_v57 }
 0x5cc   :  { %1992 = vmatpush3.xpose.msk.msra.mxu1 %vm162_vm2, %v1063_v58  ;;  %1993 = vmatprep.mubr.msk.f32.mxu1 %vm2227_vm1, %v2226_v8 }
 0x5cd   :  { %2001 = vmatprep.subr.mxu1 %v2226_v8 }
 0x5cf   :  { %1994 = vmatmul.mubr.msk.f32.vlgmr.msra.gmra.mrb[14].mxu1 %vm162_vm2, %v1061_v59 }
 0x5d0   :  { %2003 = vmatprep.mubr.msk.f32.mxu1 %vm2227_vm1, %v2226_v8 }
 0x5fa   :  { %v659_v5 = vpop.xlane.xlu0 %658 }
 0x5fb   :  { %2084 = vrcp.f32 %v659_v5 }
 0x5fe   :  { %v668_v6 = vpop.permute.xlu0 %667 }
 0x5ff   :  { %1967 = vmatpush3.msra.mxu0 %v668_v6 }
 0x600   :  { %1976 = vmatprep.subr.mxu0 %v819_v13 }
 0x602   :  { %v1237_v7 = vpop.permute.xlu0 %1236 }
 0x603   :  { %2002 = vmatpush3.msra.mxu1 %v1237_v7 }
 0x604   :  { %2011 = vmatprep.subr.mxu1 %v2226_v8 }
 0x605   :  { %v2085_v11 = vpop.eup %2084 }
 0x606   :  { %v665_v12 = vmul.f32 %v2085_v11, %v2081_v63  ;;  %v1399_v39 = vpop.permute.xlu0 %1398 }
 0x608   :  { %1969 = vmatmul.mubr.msk.f32.vlgmr.msra.gmra.mrb[4].mxu0 %vm162_vm2, %v665_v12 }
 0x609   :  { %1977 = vmatpush3.msra.mxu0 %v819_v13 }
 0x60a   :  { %1981 = vmatprep.subr.mxu0 %v488_v14  ;;  %v1477_v43 = vpop.permute.xlu0 %1476 }
 0x69a   :  { %v815_v15 = vpop.f32.mrb[10].mxu1 }
 0x69b   :  { %v1975_v16 = vpop.f32.mrb[11].mxu1 }
 0x69e   :  { %v1056_v17 = vpop.f32.mrb[12].mxu1 }
 0x69f   :  { %v1990_v18 = vpop.f32.mrb[13].mxu1  ;;  %v1138_v19 = vsel %vm162_vm2, %v1056_v17, -inf }
 0x6a0   :  { %1139 = vmax.xlane.f32.xlu1 %v1138_v19 }
 0x6a2   :  { %v1134_v20 = vpop.f32.mrb[14].mxu1 }
 0x6a3   :  { %v1995_v21 = vpop.f32.mrb[15].mxu1  ;;  %v1141_v22 = vsel %vm162_vm2, %v1134_v20, -inf }
 0x6a4   :  { %1142 = vmax.xlane.f32.xlu1 %v1141_v22 }
 0x6db   :  { %v739_v23 = vpop.f32.mrb[4].mxu0 }
 0x6dc   :  { %v1970_v24 = vpop.f32.mrb[5].mxu0  ;;  %1978 = vmatprep.mubr.msk.f32.mxu0 %vm162_vm2, %v739_v23 }
 0x6dd   :  { %1979 = vmatmul.mubr.msk.f32.vlgmr.msra.gmra.mrb[6].mxu0 %vm162_vm2, %v815_v15 }
 0x6de   :  { %1983 = vmatprep.mubr.msk.f32.mxu0 %vm162_vm2, %v2383_v42  ;;  %1982 = vmatpush3.msra.mxu0 %v488_v14 }
 0x6df   :  { %1996 = vmatprep.subr.mxu0 %v2226_v8 }
 0x6e5   :  { %1984 = vmatmul.mubr.msk.f32.vlgmr.msra.gmra.mrb[6].mxu0 %vm162_vm2, %v2385_v45  ;;  %v1397_v45 = vpop.permute.xlu0 %1396 }
 0x6e6   :  { %1998 = vmatprep.mubr.msk.f32.mxu0 %vm2227_vm1, %v2226_v8 }
 0x72d   :  { %v1140_v25 = vpop.xlane.xlu1 %1139 }
 0x72e   :  { %v1144_v26 = vsub.f32 %v1056_v17, %v1140_v25 }
 0x730   :  { %v1146_v27 = vmul.f32 1.442695, %v1144_v26 }
 0x731   :  { %v1143_v28 = vpop.xlane.xlu1 %1142 }
 0x732   :  { %2086 = vpow2.f32 %v1146_v27  ;;  %v1145_v29 = vsub.f32 %v1134_v20, %v1143_v28 }
 0x734   :  { %v1148_v30 = vmul.f32 1.442695, %v1145_v29 }
 0x736   :  { %2088 = vpow2.f32 %v1148_v30 }
 0x73c   :  { %v2087_v31 = vpop.eup %2086 }
 0x73d   :  { %v1150_v32 = vsel %vm162_vm2, %v2087_v31, 0.0 }
 0x73e   :  { %1151 = vadd.xlane.f32.xlu1 %v1150_v32 }
 0x740   :  { %v2089_v33 = vpop.eup %2088 }
 0x741   :  { %v1153_v34 = vsel %vm162_vm2, %v2089_v33, 0.0 }
 0x742   :  { %1154 = vadd.xlane.f32.xlu1 %v1153_v34 }
 0x753   :  { %1160 = vrot.lane.b32.xlu1 %v2339_v10, %s2235_s19 }
 0x757   :  { %1474 = vrot.lane.b32.xlu1 %v2337_v9, %s2237_s21 }
 0x7cb   :  { %v1152_v35 = vpop.xlane.xlu1 %1151 }
 0x7cc   :  { %2090 = vrcp.f32 %v1152_v35 }
 0x7cf   :  { %v1155_v36 = vpop.xlane.xlu1 %1154 }
 0x7d0   :  { %2092 = vrcp.f32 %v1155_v36 }
 0x7d3   :  { %v1161_v38 = vpop.permute.xlu1 %1160 }
 0x7d4   :  { %1997 = vmatpush3.msra.mxu0 %v1161_v38 }
 0x7d5   :  { %2006 = vmatprep.subr.mxu0 %v1312_v37 }
 0x7d6   :  { %v2091_v40 = vpop.eup %2090 }
 0x7d7   :  { %v1158_v41 = vmul.f32 %v2091_v40, %v2087_v31  ;;  %v1475_v50 = vpop.permute.xlu1 %1474 }
 0x7d9   :  { %1999 = vmatmul.mubr.msk.f32.vlgmr.msra.gmra.mrb[8].mxu0 %vm162_vm2, %v1158_v41 }
 0x7da   :  { %v2093_v42 = vpop.eup %2092  ;;  %2007 = vmatpush3.msra.mxu0 %v1312_v37 }
 0x7db   :  { %v1159_v44 = vmul.f32 %v2093_v42, %v2089_v33  ;;  %2016 = vmatprep.subr.mxu0 %v2226_v8 }
 0x7dd   :  { %2004 = vmatmul.mubr.msk.f32.vlgmr.msra.gmra.mrb[16].mxu1 %vm162_vm2, %v1159_v44 }
 0x7de   :  { %2012 = vmatpush3.xpose.msk.msra.mxu1 %vm162_vm2, %v1399_v39  ;;  %2013 = vmatprep.mubr.msk.f32.mxu1 %vm2227_vm1, %v2226_v8 }
 0x7df   :  { %2021 = vmatprep.subr.mxu1 %v2226_v8 }
 0x7e1   :  { %2014 = vmatmul.mubr.msk.f32.vlgmr.msra.gmra.mrb[18].mxu1 %vm162_vm2, %v1397_v45 }
 0x7e2   :  { %2023 = vmatprep.mubr.msk.f32.mxu1 %vm2227_vm1, %v2226_v8 }
 0x8ac   :  { %v1232_v46 = vpop.f32.mrb[8].mxu0 }
 0x8ad   :  { %v2000_v47 = vpop.f32.mrb[9].mxu0  ;;  %2008 = vmatprep.mubr.msk.f32.mxu0 %vm162_vm2, %v1232_v46 }
 0x8b0   :  { %v1308_v48 = vpop.f32.mrb[16].mxu1 }
 0x8b1   :  { %v2005_v49 = vpop.f32.mrb[17].mxu1  ;;  %2009 = vmatmul.mubr.msk.f32.vlgmr.msra.gmra.mrb[6].mxu0 %vm162_vm2, %v1308_v48 }
 0x8b2   :  { %2017 = vmatpush3.xpose.msk.msra.mxu0 %vm162_vm2, %v1477_v43  ;;  %2018 = vmatprep.mubr.msk.f32.mxu0 %vm2227_vm1, %v2226_v8 }
 0x8b3   :  { %2026 = vmatprep.subr.mxu0 %v2226_v8 }
 0x8b4   :  { %v1470_v51 = vpop.f32.mrb[18].mxu1 }
 0x8b5   :  { %v2015_v52 = vpop.f32.mrb[19].mxu1  ;;  %2019 = vmatmul.mubr.msk.f32.vlgmr.msra.gmra.mrb[10].mxu0 %vm162_vm2, %v1475_v50  ;;  %v1552_v53 = vsel %vm162_vm2, %v1470_v51, -inf }
 0x8b6   :  { %1553 = vmax.xlane.f32.xlu0 %v1552_v53  ;;  %2028 = vmatprep.mubr.msk.f32.mxu0 %vm2227_vm1, %v2226_v8 }
 0x943   :  { %v1554_v54 = vpop.xlane.xlu0 %1553 }
 0x944   :  { %v1558_v55 = vsub.f32 %v1470_v51, %v1554_v54 }
 0x946   :  { %v1560_v56 = vmul.f32 1.442695, %v1558_v55 }
 0x948   :  { %2094 = vpow2.f32 %v1560_v56 }
 0x952   :  { %v2095_v57 = vpop.eup %2094 }
 0x953   :  { %v1564_v58 = vsel %vm162_vm2, %v2095_v57, 0.0 }
 0x954   :  { %1565 = vadd.xlane.f32.xlu0 %v1564_v58 }
 0x988   :  { %v1548_v59 = vpop.f32.mrb[10].mxu0 }
 0x989   :  { %v2020_v60 = vpop.f32.mrb[11].mxu0  ;;  %v1555_v61 = vsel %vm162_vm2, %v1548_v59, -inf }
 0x98a   :  { %1556 = vmax.xlane.f32.xlu1 %v1555_v61 }
 0x99b   :  { %1574 = vrot.lane.b32.xlu1 %v2339_v10, %s2238_s22  ;;  %v1726_v10 = vld [vmem:[#allocation7 + $0x18] sm:$0xff] }
 0x9e1   :  { %v1566_v62 = vpop.xlane.xlu0 %1565 }
 0x9e2   :  { %2096 = vrcp.f32 %v1566_v62 }
 0x9ec   :  { %v2097_v8 = vpop.eup %2096 }
 0x9ed   :  { %v1572_v2 = vmul.f32 %v2097_v8, %v2095_v57 }
 0xa17   :  { %v1557_v63 = vpop.xlane.xlu1 %1556 }
 0xa18   :  { %v1559_v0 = vsub.f32 %v1548_v59, %v1557_v63 }
 0xa1a   :  { %v1562_v1 = vmul.f32 1.442695, %v1559_v0 }
 0xa1b   :  { %v1575_v3 = vpop.permute.xlu1 %1574 }
 0xa1c   :  { %2098 = vpow2.f32 %v1562_v1  ;;  %2022 = vmatpush3.msra.mxu1 %v1575_v3 }
 0xa1d   :  { %2024 = vmatmul.mubr.msk.f32.vlgmr.msra.gmra.mrb[20].mxu1 %vm162_vm2, %v1572_v2 }
 0xa26   :  { %v2099_v4 = vpop.eup %2098 }
 0xa27   :  { %v1567_v5 = vsel %vm162_vm2, %v2099_v4, 0.0 }
 0xa28   :  { %1568 = vadd.xlane.f32.xlu0 %v1567_v5 }
 0xa3e   :  { %1650 = vrot.lane.b32.xlu0 %v2337_v9, %s2238_s22  ;;  %v1874_v9 = vld [vmem:[#allocation8] ss:$0 sm:$0xff] }
 0xab5   :  { %v1569_v6 = vpop.xlane.xlu0 %1568 }
 0xab6   :  { %2100 = vrcp.f32 %v1569_v6 }
 0xab9   :  { %v1651_v7 = vpop.permute.xlu0 %1650 }
 0xaba   :  { %2027 = vmatpush3.msra.mxu0 %v1651_v7 }
 0xabb   :  { %2031 = vmatprep.subr.mxu0 %v1726_v10 }
 0xac0   :  { %v2101_v11 = vpop.eup %2100 }
 0xac1   :  { %v1573_v12 = vmul.f32 %v2101_v11, %v2099_v4 }
 0xac3   :  { %2029 = vmatmul.mubr.msk.f32.vlgmr.msra.gmra.mrb[12].mxu0 %vm162_vm2, %v1573_v12 }
 0xac4   :  { %2032 = vmatpush3.msra.mxu0 %v1726_v10 }
 0xaf0   :  { %v1646_v13 = vpop.f32.mrb[20].mxu1 }
 0xaf1   :  { %v2025_v14 = vpop.f32.mrb[21].mxu1  ;;  %2033 = vmatprep.mubr.msk.f32.mxu0 %vm162_vm2, %v1646_v13 }
 0xb96   :  { %v1722_v15 = vpop.f32.mrb[12].mxu0 }
 0xb97   :  { %v2030_v16 = vpop.f32.mrb[13].mxu0  ;;  %2034 = vmatmul.mubr.msk.f32.vlgmr.msra.gmra.mrb[6].mxu0 %vm162_vm2, %v1722_v15 }
 0xc6a   :  { %v2035_v17 = vpop.f32.mrb[6].mxu0 }
 0xc6b   :  { %v1818_v18 = vadd.f32 %v2035_v17, %v1874_v9  ;;  %v1799_v19 = vpop.f32.mrb[7].mxu0 }
 0xc6c   :  { %v1817_v20 = vadd.f32 %v1874_v9, %v1799_v19 }
 0xc6d   :  { %1820 = vst.msk [vmem:[#allocation10 + $0x8] sm:$0xff] %vm77_vm0, %v1818_v18 }
 0xc6e   :  { %1819 = vst.msk [vmem:[#allocation10] sm:$0xff] %vm77_vm0, %v1817_v20 }
 0xc6f   :  { %2201 = shalt.err (!%p2198_p8)
}
 0xc70   :  { %s2202_s26 = scalar_lea.hbm %s2486_s4, 256 }
 0xc71   :  { %p2203_p9 = scmp.ne.s32.totalorder %s2486_s4, %s2202_s26  ;;  %p2206_p10 = scmp.lt.u32.totalorder %s2202_s26, %s2486_s4 }
 0xc73   :  { %p2208_p11 = pnand %p2206_p10, %p2203_p9 }
 0xc75   :  { %2211 = shalt.err (!%p2208_p11)
}
 0xc76   :  { %1832 = dma.vmem_to_hbm [thread:$0]  %s1827_s24, 256, %s2486_s4, [#allocation4], %s2222_s27, %s2222_s27, %s2223_s28  }
 0xc77   :  { %2218 = dma.done.wait [#allocation4], 256  }
 0xc78   :  { %2219 = vsyncadd [#allocation4], 4294967040 }
 0xc79   :  { %1836 = vsyncpa [#allocation3], 1 }
 0xc7a   :  { %1837 = vsyncpa [#allocation6], 1 }
 0xc7b   :  { %1838 = vsyncpa [#allocation9], 1 }
 0xc7c   :  { %1839 = vsyncpa [#allocation4], 1 }

</bundles_post_ra>
